<compile_context>
chip_gen: v7x
topology: tpu7x:2x2x1
jax: 0.10.0
libtpu: 0.0.40
codegen_flags: <defaults>
</compile_context>

<pallas_src>
import functools

import jax
import jax.numpy as jnp
from jax.experimental import pallas as pl
from jax.experimental.pallas import tpu as pltpu


def _gru_chunk_kernel(x_ref, h0_ref, w_x_ref, w_h_ref, w_c_ref, b_x_ref,
                      out_ref, h_ref, rucx_ref, *, hp, tc):
    """Runs `tc` GRU steps per grid iteration; h carried in VMEM scratch."""
    chunk = pl.program_id(0)

    @pl.when(chunk == 0)
    def _():
        h_ref[...] = h0_ref[...].astype(jnp.float32)

    b = x_ref.shape[1]
    i = x_ref.shape[2]

    # --- Off the recurrent path: one MXU-efficient matmul for the whole
    # chunk's x-only projection [r_x | u_x | c_x], with all biases
    # (b_h_ru, +forget_bias on the u half, b_rh_c) pre-folded in.
    x_flat = x_ref[...].reshape(tc * b, i).astype(jnp.float32)
    rucx_all = jnp.dot(x_flat, w_x_ref[...], preferred_element_type=jnp.float32)
    rucx_ref[...] = (rucx_all + b_x_ref[...]).reshape(tc, b, 3 * hp)

    # --- Serial recurrence over the chunk (static unroll; tc is small).
    # Padded-lane invariant: padded w_h/w_c rows+cols and bias pads are zero,
    # so padded h lanes stay exactly 0 every step (padded r/u saturate to 0.5
    # but multiply zero-valued padded h / zero-padded w_c contributions).
    h = h_ref[...]                                            # (B, Hp) f32
    for t in range(tc):
        rucx_t = rucx_ref[t]                                  # (B, 3*Hp)
        ruh = jnp.dot(h, w_h_ref[...], preferred_element_type=jnp.float32)
        r = jax.nn.sigmoid(rucx_t[:, :hp] + ruh[:, :hp])
        u = jax.nn.sigmoid(rucx_t[:, hp:2 * hp] + ruh[:, hp:])
        c = jnp.tanh(rucx_t[:, 2 * hp:]
                     + jnp.dot(r * h, w_c_ref[...],
                               preferred_element_type=jnp.float32))
        h = c + u * (h - c)                                   # u*h + (1-u)*c
        out_ref[t] = h.astype(out_ref.dtype)                  # lane-dense store
    h_ref[...] = h


def _pack_params(params, hidden_size, hp, forget_bias):
    """Pad/fuse weights so padded h lanes stay exactly zero across steps."""
    H = hidden_size
    in_size = params["w_x_ru"].shape[0]
    f32 = jnp.float32

    # Fused x projection: [r_x | u_x | c_x], each gate padded to hp lanes.
    w_x = jnp.zeros((in_size, 3 * hp), f32)
    w_x = w_x.at[:, 0:H].set(params["w_x_ru"][:, :H].astype(f32))
    w_x = w_x.at[:, hp:hp + H].set(params["w_x_ru"][:, H:].astype(f32))
    w_x = w_x.at[:, 2 * hp:2 * hp + H].set(params["w_x_c"].astype(f32))

    # All additive constants folded into one (1, 3hp) bias applied to rucx:
    #   [ b_h_r | b_h_u + forget_bias | b_rh_c ]
    b_x = jnp.zeros((1, 3 * hp), f32)
    b_x = b_x.at[0, 0:H].set(params["b_h_ru"][:H].astype(f32))
    b_x = b_x.at[0, hp:hp + H].set(params["b_h_ru"][H:].astype(f32) + forget_bias)
    b_x = b_x.at[0, 2 * hp:2 * hp + H].set(params["b_rh_c"].astype(f32))

    # Hidden -> (r, u), padded rows/cols zero.
    w_h = jnp.zeros((hp, 2 * hp), f32)
    w_h = w_h.at[:H, 0:H].set(params["w_h_ru"][:, :H].astype(f32))
    w_h = w_h.at[:H, hp:hp + H].set(params["w_h_ru"][:, H:].astype(f32))

    # (r*h) -> candidate, padded rows/cols zero.
    w_c = jnp.zeros((hp, hp), f32)
    w_c = w_c.at[:H, :H].set(params["w_rh_c"].astype(f32))

    return w_x, w_h, w_c, b_x


def lfads_gen_gru_rollout(xs, h0, params, *, forget_bias=1.0, tc=None,
                          trim=False):
    """Rolls the LFADS_GenGRUCell over a sequence inside ONE Pallas kernel.

    xs : (T, B, I) float32 inputs, h0 : (B, H) float32 initial hidden state.
    params: w_x_ru (I,2H), w_x_c (I,H), w_h_ru (H,2H), b_h_ru (2H,),
            w_rh_c (H,H), b_rh_c (H,)  -- weights stored as (in, out) = W.T.

    Returns hs : (T, B, Hp) padded hidden states (Hp = 128-lane padded H).
    Pass trim=True (or slice [:, :, :H] lazily) for the logical H lanes.
    """
    T, B, I = xs.shape
    H = h0.shape[1]
    hp = max(128, ((H + 127) // 128) * 128)     # pad hidden to lane multiple

    if tc is None:
        tc = T if T <= 16 else 16               # timesteps per grid iteration
    n_chunks = -(-T // tc)
    t_pad = n_chunks * tc
    if t_pad != T:
        xs = jnp.concatenate(
            [xs, jnp.zeros((t_pad - T, B, I), xs.dtype)], axis=0)

    w_x, w_h, w_c, b_x = _pack_params(params, H, hp, forget_bias)
    h0_p = jnp.zeros((B, hp), jnp.float32).at[:, :H].set(h0.astype(jnp.float32))

    kernel = functools.partial(_gru_chunk_kernel, hp=hp, tc=tc)

    hs = pl.pallas_call(
        kernel,
        out_shape=jax.ShapeDtypeStruct((t_pad, B, hp), h0.dtype),
        grid_spec=pltpu.PrefetchScalarGridSpec(
            num_scalar_prefetch=0,
            grid=(n_chunks,),
            in_specs=[
                pl.BlockSpec((tc, B, I), lambda c: (c, 0, 0)),   # x chunk streamed
                pl.BlockSpec((B, hp), lambda c: (0, 0)),         # h0 (resident)
                pl.BlockSpec((I, 3 * hp), lambda c: (0, 0)),     # fused W_x
                pl.BlockSpec((hp, 2 * hp), lambda c: (0, 0)),    # W_h_ru
                pl.BlockSpec((hp, hp), lambda c: (0, 0)),        # W_rh_c
                pl.BlockSpec((1, 3 * hp), lambda c: (0, 0)),     # fused biases
            ],
            out_specs=pl.BlockSpec((tc, B, hp), lambda c: (c, 0, 0)),
            scratch_shapes=[
                pltpu.VMEM((B, hp), jnp.float32),           # carried hidden h
                pltpu.VMEM((tc, B, 3 * hp), jnp.float32),   # per-chunk rucx
            ],
        ),
        compiler_params=pltpu.CompilerParams(
            dimension_semantics=("arbitrary",),             # recurrence over chunks
        ),
    )(xs, h0_p, w_x, w_h, w_c, b_x)

    if t_pad != T:
        hs = hs[:T]
    if trim:
        hs = hs[:, :, :H]
    return hs


def lfads_gen_gru_cell(x, h, params, *, forget_bias=1.0):
    """Single-step API matching the PyTorch module's forward(x, h)."""
    hs = lfads_gen_gru_rollout(x[None], h, params, forget_bias=forget_bias,
                               tc=1, trim=True)
    return hs[0]


def _init_params(key, input_size, hidden_size):
    """Deterministic init mimicking nn.Linear default (uniform(-1/sqrt(fan_in)))."""
    ks = jax.random.split(key, 6)
    ru = 2 * hidden_size

    def unif(k, shape, fan_in):
        bound = 1.0 / jnp.sqrt(jnp.asarray(fan_in, jnp.float32))
        return jax.random.uniform(k, shape, jnp.float32, -bound, bound)

    return {
        # stored as (in_features, out_features) == PyTorch weight.T
        "w_x_ru": unif(ks[0], (input_size, ru), input_size),
        "w_x_c":  unif(ks[1], (input_size, hidden_size), input_size),
        "w_h_ru": unif(ks[2], (hidden_size, ru), hidden_size),
        "b_h_ru": unif(ks[3], (ru,), hidden_size),
        "w_rh_c": unif(ks[4], (hidden_size, hidden_size), hidden_size),
        "b_rh_c": unif(ks[5], (hidden_size,), hidden_size),
    }


def _reference_step(x, h, p, forget_bias=1.0):
    """Pure-JAX reference mirroring the PyTorch forward."""
    H = h.shape[1]
    ru_x = x @ p["w_x_ru"]
    r_x, u_x = ru_x[:, :H], ru_x[:, H:]
    ru_h = h @ p["w_h_ru"] + p["b_h_ru"]
    r_h, u_h = ru_h[:, :H], ru_h[:, H:]
    r = jax.nn.sigmoid(r_x + r_h)
    u = jax.nn.sigmoid(u_x + u_h + forget_bias)
    c = jnp.tanh(x @ p["w_x_c"] + (r * h) @ p["w_rh_c"] + p["b_rh_c"])
    return u * h + (1.0 - u) * c


if __name__ == "__main__":
    T, B, I, H = 8, 8, 16, 32
    key = jax.random.PRNGKey(0)
    kx, kh, kp = jax.random.split(key, 3)

    xs = jax.random.normal(kx, (T, B, I), jnp.float32)
    h0 = jax.random.normal(kh, (B, H), jnp.float32)
    params = _init_params(kp, I, H)

    # Sequence rollout (chunked time loop inside the kernel); padded output,
    # consumer slices the logical H lanes lazily.
    hs_pad = lfads_gen_gru_rollout(xs, h0, params, forget_bias=1.0)
    hs_pad = jax.block_until_ready(hs_pad)
    assert hs_pad.shape[0] == T and hs_pad.shape[1] == B
    hs = hs_pad[:, :, :H]

    # Pure-JAX step-by-step reference.
    h = h0
    ref_steps = []
    for t in range(T):
        h = _reference_step(xs[t], h, params, forget_bias=1.0)
        ref_steps.append(h)
    ref = jnp.stack(ref_steps)
    assert jnp.allclose(hs, ref, atol=1e-4, rtol=1e-4)
    # Padded lanes must stay exactly zero (invariant of the packed weights).
    assert jnp.all(hs_pad[:, :, H:] == 0.0)

    # Single-step API parity with the PyTorch module's forward(x, h).
    h1 = lfads_gen_gru_cell(xs[0], h0, params, forget_bias=1.0)
    h1 = jax.block_until_ready(h1)
    assert jnp.allclose(h1, _reference_step(xs[0], h0, params, 1.0),
                        atol=1e-4, rtol=1e-4)

    print("KERNEL_OK")
</pallas_src>

<mosaic_0001>
module attributes {stable_mosaic.version = 11 : i64} {
  func.func @_gru_chunk_kernel(%arg0: i32, %arg1: memref<8x8x16xf32, #tpu.memory_space<vmem>>, %arg2: memref<8x128xf32, #tpu.memory_space<vmem>>, %arg3: memref<16x384xf32, #tpu.memory_space<vmem>>, %arg4: memref<128x256xf32, #tpu.memory_space<vmem>>, %arg5: memref<128x128xf32, #tpu.memory_space<vmem>>, %arg6: memref<1x384xf32, #tpu.memory_space<vmem>>, %arg7: memref<8x8x128xf32, #tpu.memory_space<vmem>>, %arg8: memref<8x128xf32, #tpu.memory_space<vmem>>, %arg9: memref<8x8x384xf32, #tpu.memory_space<vmem>>) attributes {dimension_semantics = [#tpu.dimension_semantics<arbitrary>], iteration_bounds = array<i64: 1>, scalar_prefetch = 0 : i64, scratch_operands = 2 : i64, tpu.core_type = #tpu.core_type<tc>, window_params = [{transform_indices = @transform_0, window_bounds = array<i64: 8, 8, 16>}, {pipeline_mode = #tpu.pipeline_mode<synchronous>, transform_indices = @transform_1, window_bounds = array<i64: 8, 128>}, {pipeline_mode = #tpu.pipeline_mode<synchronous>, transform_indices = @transform_2, window_bounds = array<i64: 16, 384>}, {pipeline_mode = #tpu.pipeline_mode<synchronous>, transform_indices = @transform_3, window_bounds = array<i64: 128, 256>}, {pipeline_mode = #tpu.pipeline_mode<synchronous>, transform_indices = @transform_4, window_bounds = array<i64: 128, 128>}, {pipeline_mode = #tpu.pipeline_mode<synchronous>, transform_indices = @transform_5, window_bounds = array<i64: 1, 384>}, {transform_indices = @transform_6, window_bounds = array<i64: 8, 8, 128>}]} {
    %c0_i32 = arith.constant 0 : i32
    %0 = arith.cmpi eq, %arg0, %c0_i32 : i32
    %1 = arith.extui %0 : i1 to i32
    %c0_i32_0 = arith.constant 0 : i32
    %2 = arith.cmpi ne, %1, %c0_i32_0 : i32
    scf.if %2 {
      %c0_119 = arith.constant 0 : index
      %c0_120 = arith.constant 0 : index
      %270 = vector.load %arg2[%c0_119, %c0_120] : memref<8x128xf32, #tpu.memory_space<vmem>>, vector<8x128xf32>
      %c0_121 = arith.constant 0 : index
      %c0_122 = arith.constant 0 : index
      %271 = vector.load %arg8[%c0_121, %c0_122] : memref<8x128xf32, #tpu.memory_space<vmem>>, vector<8x128xf32>
      tpu.vector_store %arg8[%c0_121, %c0_122], %270 {strides = array<i32>} : memref<8x128xf32, #tpu.memory_space<vmem>>, vector<8x128xf32>,
    } else {
    }
    %c0 = arith.constant 0 : index
    %c0_1 = arith.constant 0 : index
    %c0_2 = arith.constant 0 : index
    %3 = vector.load %arg1[%c0, %c0_1, %c0_2] : memref<8x8x16xf32, #tpu.memory_space<vmem>>, vector<8x8x16xf32>
    %4 = vector.shape_cast %3 : vector<8x8x16xf32> to vector<64x16xf32>
    %c0_3 = arith.constant 0 : index
    %c0_4 = arith.constant 0 : index
    %5 = vector.load %arg3[%c0_3, %c0_4] : memref<16x384xf32, #tpu.memory_space<vmem>>, vector<16x384xf32>
    %cst = arith.constant dense<0.000000e+00> : vector<64x384xf32>
    %6 = tpu.matmul %4, %5, %cst {dimension_numbers = #tpu.dot_dimension_numbers<[1], [0], [0], [1], [0, 0, 1, 1], [], []>} : vector<64x16xf32>, vector<16x384xf32>, vector<64x384xf32> -> vector<64x384xf32>
    %c0_5 = arith.constant 0 : index
    %c0_6 = arith.constant 0 : index
    %7 = vector.load %arg6[%c0_5, %c0_6] : memref<1x384xf32, #tpu.memory_space<vmem>>, vector<1x384xf32>
    %8 = vector.broadcast %7 : vector<1x384xf32> to vector<64x384xf32>
    %9 = arith.addf %6, %8 : vector<64x384xf32>
    %10 = vector.shape_cast %9 : vector<64x384xf32> to vector<8x8x384xf32>
    %c0_7 = arith.constant 0 : index
    %c0_8 = arith.constant 0 : index
    %c0_9 = arith.constant 0 : index
    %11 = vector.load %arg9[%c0_7, %c0_8, %c0_9] : memref<8x8x384xf32, #tpu.memory_space<vmem>>, vector<8x8x384xf32>
    tpu.vector_store %arg9[%c0_7, %c0_8, %c0_9], %10 {strides = array<i32>} : memref<8x8x384xf32, #tpu.memory_space<vmem>>, vector<8x8x384xf32>,
    %c0_10 = arith.constant 0 : index
    %c0_11 = arith.constant 0 : index
    %12 = vector.load %arg8[%c0_10, %c0_11] : memref<8x128xf32, #tpu.memory_space<vmem>>, vector<8x128xf32>
    %c0_12 = arith.constant 0 : index
    %c0_13 = arith.constant 0 : index
    %c0_14 = arith.constant 0 : index
    %13 = vector.load %arg9[%c0_12, %c0_13, %c0_14] : memref<8x8x384xf32, #tpu.memory_space<vmem>>, vector<1x8x384xf32>
    %14 = vector.shape_cast %13 : vector<1x8x384xf32> to vector<8x384xf32>
    %c0_15 = arith.constant 0 : index
    %c0_16 = arith.constant 0 : index
    %15 = vector.load %arg4[%c0_15, %c0_16] : memref<128x256xf32, #tpu.memory_space<vmem>>, vector<128x256xf32>
    %cst_17 = arith.constant dense<0.000000e+00> : vector<8x256xf32>
    %16 = tpu.matmul %12, %15, %cst_17 {dimension_numbers = #tpu.dot_dimension_numbers<[1], [0], [0], [1], [0, 0, 1, 1], [], []>} : vector<8x128xf32>, vector<128x256xf32>, vector<8x256xf32> -> vector<8x256xf32>
    %17 = vector.extract_strided_slice %14 {offsets = [0, 0], sizes = [8, 128], strides = [1, 1]} : vector<8x384xf32> to vector<8x128xf32>
    %18 = vector.extract_strided_slice %16 {offsets = [0, 0], sizes = [8, 128], strides = [1, 1]} : vector<8x256xf32> to vector<8x128xf32>
    %19 = arith.addf %17, %18 : vector<8x128xf32>
    %20 = arith.negf %19 : vector<8x128xf32>
    %21 = math.exp %20 : vector<8x128xf32>
    %cst_18 = arith.constant 1.000000e+00 : f32
    %22 = vector.broadcast %cst_18 : f32 to vector<8x128xf32>
    %23 = arith.addf %22, %21 : vector<8x128xf32>
    %24 = arith.divf %22, %23 : vector<8x128xf32>
    %25 = vector.extract_strided_slice %14 {offsets = [0, 128], sizes = [8, 128], strides = [1, 1]} : vector<8x384xf32> to vector<8x128xf32>
    %26 = vector.extract_strided_slice %16 {offsets = [0, 128], sizes = [8, 128], strides = [1, 1]} : vector<8x256xf32> to vector<8x128xf32>
    %27 = arith.addf %25, %26 : vector<8x128xf32>
    %28 = arith.negf %27 : vector<8x128xf32>
    %29 = math.exp %28 : vector<8x128xf32>
    %cst_19 = arith.constant 1.000000e+00 : f32
    %30 = vector.broadcast %cst_19 : f32 to vector<8x128xf32>
    %31 = arith.addf %30, %29 : vector<8x128xf32>
    %32 = arith.divf %30, %31 : vector<8x128xf32>
    %33 = vector.extract_strided_slice %14 {offsets = [0, 256], sizes = [8, 128], strides = [1, 1]} : vector<8x384xf32> to vector<8x128xf32>
    %34 = arith.mulf %24, %12 : vector<8x128xf32>
    %c0_20 = arith.constant 0 : index
    %c0_21 = arith.constant 0 : index
    %35 = vector.load %arg5[%c0_20, %c0_21] : memref<128x128xf32, #tpu.memory_space<vmem>>, vector<128x128xf32>
    %cst_22 = arith.constant dense<0.000000e+00> : vector<8x128xf32>
    %36 = tpu.matmul %34, %35, %cst_22 {dimension_numbers = #tpu.dot_dimension_numbers<[1], [0], [0], [1], [0, 0, 1, 1], [], []>} : vector<8x128xf32>, vector<128x128xf32>, vector<8x128xf32> -> vector<8x128xf32>
    %37 = arith.addf %33, %36 : vector<8x128xf32>
    %38 = math.tanh %37 : vector<8x128xf32>
    %39 = arith.subf %12, %38 : vector<8x128xf32>
    %40 = arith.mulf %32, %39 : vector<8x128xf32>
    %41 = arith.addf %38, %40 : vector<8x128xf32>
    %c0_23 = arith.constant 0 : index
    %c0_24 = arith.constant 0 : index
    %c0_25 = arith.constant 0 : index
    %42 = vector.load %arg7[%c0_23, %c0_24, %c0_25] : memref<8x8x128xf32, #tpu.memory_space<vmem>>, vector<1x8x128xf32>
    %43 = vector.shape_cast %42 : vector<1x8x128xf32> to vector<8x128xf32>
    %44 = vector.shape_cast %41 : vector<8x128xf32> to vector<1x8x128xf32>
    tpu.vector_store %arg7[%c0_23, %c0_24, %c0_25], %44 {strides = array<i32>} : memref<8x8x128xf32, #tpu.memory_space<vmem>>, vector<1x8x128xf32>,
    %c1 = arith.constant 1 : index
    %c0_26 = arith.constant 0 : index
    %c0_27 = arith.constant 0 : index
    %45 = vector.load %arg9[%c1, %c0_26, %c0_27] : memref<8x8x384xf32, #tpu.memory_space<vmem>>, vector<1x8x384xf32>
    %46 = vector.shape_cast %45 : vector<1x8x384xf32> to vector<8x384xf32>
    %c0_28 = arith.constant 0 : index
    %c0_29 = arith.constant 0 : index
    %47 = vector.load %arg4[%c0_28, %c0_29] : memref<128x256xf32, #tpu.memory_space<vmem>>, vector<128x256xf32>
    %cst_30 = arith.constant dense<0.000000e+00> : vector<8x256xf32>
    %48 = tpu.matmul %41, %47, %cst_30 {dimension_numbers = #tpu.dot_dimension_numbers<[1], [0], [0], [1], [0, 0, 1, 1], [], []>} : vector<8x128xf32>, vector<128x256xf32>, vector<8x256xf32> -> vector<8x256xf32>
    %49 = vector.extract_strided_slice %46 {offsets = [0, 0], sizes = [8, 128], strides = [1, 1]} : vector<8x384xf32> to vector<8x128xf32>
    %50 = vector.extract_strided_slice %48 {offsets = [0, 0], sizes = [8, 128], strides = [1, 1]} : vector<8x256xf32> to vector<8x128xf32>
    %51 = arith.addf %49, %50 : vector<8x128xf32>
    %52 = arith.negf %51 : vector<8x128xf32>
    %53 = math.exp %52 : vector<8x128xf32>
    %cst_31 = arith.constant 1.000000e+00 : f32
    %54 = vector.broadcast %cst_31 : f32 to vector<8x128xf32>
    %55 = arith.addf %54, %53 : vector<8x128xf32>
    %56 = arith.divf %54, %55 : vector<8x128xf32>
    %57 = vector.extract_strided_slice %46 {offsets = [0, 128], sizes = [8, 128], strides = [1, 1]} : vector<8x384xf32> to vector<8x128xf32>
    %58 = vector.extract_strided_slice %48 {offsets = [0, 128], sizes = [8, 128], strides = [1, 1]} : vector<8x256xf32> to vector<8x128xf32>
    %59 = arith.addf %57, %58 : vector<8x128xf32>
    %60 = arith.negf %59 : vector<8x128xf32>
    %61 = math.exp %60 : vector<8x128xf32>
    %cst_32 = arith.constant 1.000000e+00 : f32
    %62 = vector.broadcast %cst_32 : f32 to vector<8x128xf32>
    %63 = arith.addf %62, %61 : vector<8x128xf32>
    %64 = arith.divf %62, %63 : vector<8x128xf32>
    %65 = vector.extract_strided_slice %46 {offsets = [0, 256], sizes = [8, 128], strides = [1, 1]} : vector<8x384xf32> to vector<8x128xf32>
    %66 = arith.mulf %56, %41 : vector<8x128xf32>
    %c0_33 = arith.constant 0 : index
    %c0_34 = arith.constant 0 : index
    %67 = vector.load %arg5[%c0_33, %c0_34] : memref<128x128xf32, #tpu.memory_space<vmem>>, vector<128x128xf32>
    %cst_35 = arith.constant dense<0.000000e+00> : vector<8x128xf32>
    %68 = tpu.matmul %66, %67, %cst_35 {dimension_numbers = #tpu.dot_dimension_numbers<[1], [0], [0], [1], [0, 0, 1, 1], [], []>} : vector<8x128xf32>, vector<128x128xf32>, vector<8x128xf32> -> vector<8x128xf32>
    %69 = arith.addf %65, %68 : vector<8x128xf32>
    %70 = math.tanh %69 : vector<8x128xf32>
    %71 = arith.subf %41, %70 : vector<8x128xf32>
    %72 = arith.mulf %64, %71 : vector<8x128xf32>
    %73 = arith.addf %70, %72 : vector<8x128xf32>
    %c1_36 = arith.constant 1 : index
    %c0_37 = arith.constant 0 : index
    %c0_38 = arith.constant 0 : index
    %74 = vector.load %arg7[%c1_36, %c0_37, %c0_38] : memref<8x8x128xf32, #tpu.memory_space<vmem>>, vector<1x8x128xf32>
    %75 = vector.shape_cast %74 : vector<1x8x128xf32> to vector<8x128xf32>
    %76 = vector.shape_cast %73 : vector<8x128xf32> to vector<1x8x128xf32>
    tpu.vector_store %arg7[%c1_36, %c0_37, %c0_38], %76 {strides = array<i32>} : memref<8x8x128xf32, #tpu.memory_space<vmem>>, vector<1x8x128xf32>,
    %c2 = arith.constant 2 : index
    %c0_39 = arith.constant 0 : index
    %c0_40 = arith.constant 0 : index
    %77 = vector.load %arg9[%c2, %c0_39, %c0_40] : memref<8x8x384xf32, #tpu.memory_space<vmem>>, vector<1x8x384xf32>
    %78 = vector.shape_cast %77 : vector<1x8x384xf32> to vector<8x384xf32>
    %c0_41 = arith.constant 0 : index
    %c0_42 = arith.constant 0 : index
    %79 = vector.load %arg4[%c0_41, %c0_42] : memref<128x256xf32, #tpu.memory_space<vmem>>, vector<128x256xf32>
    %cst_43 = arith.constant dense<0.000000e+00> : vector<8x256xf32>
    %80 = tpu.matmul %73, %79, %cst_43 {dimension_numbers = #tpu.dot_dimension_numbers<[1], [0], [0], [1], [0, 0, 1, 1], [], []>} : vector<8x128xf32>, vector<128x256xf32>, vector<8x256xf32> -> vector<8x256xf32>
    %81 = vector.extract_strided_slice %78 {offsets = [0, 0], sizes = [8, 128], strides = [1, 1]} : vector<8x384xf32> to vector<8x128xf32>
    %82 = vector.extract_strided_slice %80 {offsets = [0, 0], sizes = [8, 128], strides = [1, 1]} : vector<8x256xf32> to vector<8x128xf32>
    %83 = arith.addf %81, %82 : vector<8x128xf32>
    %84 = arith.negf %83 : vector<8x128xf32>
    %85 = math.exp %84 : vector<8x128xf32>
    %cst_44 = arith.constant 1.000000e+00 : f32
    %86 = vector.broadcast %cst_44 : f32 to vector<8x128xf32>
    %87 = arith.addf %86, %85 : vector<8x128xf32>
    %88 = arith.divf %86, %87 : vector<8x128xf32>
    %89 = vector.extract_strided_slice %78 {offsets = [0, 128], sizes = [8, 128], strides = [1, 1]} : vector<8x384xf32> to vector<8x128xf32>
    %90 = vector.extract_strided_slice %80 {offsets = [0, 128], sizes = [8, 128], strides = [1, 1]} : vector<8x256xf32> to vector<8x128xf32>
    %91 = arith.addf %89, %90 : vector<8x128xf32>
    %92 = arith.negf %91 : vector<8x128xf32>
    %93 = math.exp %92 : vector<8x128xf32>
    %cst_45 = arith.constant 1.000000e+00 : f32
    %94 = vector.broadcast %cst_45 : f32 to vector<8x128xf32>
    %95 = arith.addf %94, %93 : vector<8x128xf32>
    %96 = arith.divf %94, %95 : vector<8x128xf32>
    %97 = vector.extract_strided_slice %78 {offsets = [0, 256], sizes = [8, 128], strides = [1, 1]} : vector<8x384xf32> to vector<8x128xf32>
    %98 = arith.mulf %88, %73 : vector<8x128xf32>
    %c0_46 = arith.constant 0 : index
    %c0_47 = arith.constant 0 : index
    %99 = vector.load %arg5[%c0_46, %c0_47] : memref<128x128xf32, #tpu.memory_space<vmem>>, vector<128x128xf32>
    %cst_48 = arith.constant dense<0.000000e+00> : vector<8x128xf32>
    %100 = tpu.matmul %98, %99, %cst_48 {dimension_numbers = #tpu.dot_dimension_numbers<[1], [0], [0], [1], [0, 0, 1, 1], [], []>} : vector<8x128xf32>, vector<128x128xf32>, vector<8x128xf32> -> vector<8x128xf32>
    %101 = arith.addf %97, %100 : vector<8x128xf32>
    %102 = math.tanh %101 : vector<8x128xf32>
    %103 = arith.subf %73, %102 : vector<8x128xf32>
    %104 = arith.mulf %96, %103 : vector<8x128xf32>
    %105 = arith.addf %102, %104 : vector<8x128xf32>
    %c2_49 = arith.constant 2 : index
    %c0_50 = arith.constant 0 : index
    %c0_51 = arith.constant 0 : index
    %106 = vector.load %arg7[%c2_49, %c0_50, %c0_51] : memref<8x8x128xf32, #tpu.memory_space<vmem>>, vector<1x8x128xf32>
    %107 = vector.shape_cast %106 : vector<1x8x128xf32> to vector<8x128xf32>
    %108 = vector.shape_cast %105 : vector<8x128xf32> to vector<1x8x128xf32>
    tpu.vector_store %arg7[%c2_49, %c0_50, %c0_51], %108 {strides = array<i32>} : memref<8x8x128xf32, #tpu.memory_space<vmem>>, vector<1x8x128xf32>,
    %c3 = arith.constant 3 : index
    %c0_52 = arith.constant 0 : index
    %c0_53 = arith.constant 0 : index
    %109 = vector.load %arg9[%c3, %c0_52, %c0_53] : memref<8x8x384xf32, #tpu.memory_space<vmem>>, vector<1x8x384xf32>
    %110 = vector.shape_cast %109 : vector<1x8x384xf32> to vector<8x384xf32>
    %c0_54 = arith.constant 0 : index
    %c0_55 = arith.constant 0 : index
    %111 = vector.load %arg4[%c0_54, %c0_55] : memref<128x256xf32, #tpu.memory_space<vmem>>, vector<128x256xf32>
    %cst_56 = arith.constant dense<0.000000e+00> : vector<8x256xf32>
    %112 = tpu.matmul %105, %111, %cst_56 {dimension_numbers = #tpu.dot_dimension_numbers<[1], [0], [0], [1], [0, 0, 1, 1], [], []>} : vector<8x128xf32>, vector<128x256xf32>, vector<8x256xf32> -> vector<8x256xf32>
    %113 = vector.extract_strided_slice %110 {offsets = [0, 0], sizes = [8, 128], strides = [1, 1]} : vector<8x384xf32> to vector<8x128xf32>
    %114 = vector.extract_strided_slice %112 {offsets = [0, 0], sizes = [8, 128], strides = [1, 1]} : vector<8x256xf32> to vector<8x128xf32>
    %115 = arith.addf %113, %114 : vector<8x128xf32>
    %116 = arith.negf %115 : vector<8x128xf32>
    %117 = math.exp %116 : vector<8x128xf32>
    %cst_57 = arith.constant 1.000000e+00 : f32
    %118 = vector.broadcast %cst_57 : f32 to vector<8x128xf32>
    %119 = arith.addf %118, %117 : vector<8x128xf32>
    %120 = arith.divf %118, %119 : vector<8x128xf32>
    %121 = vector.extract_strided_slice %110 {offsets = [0, 128], sizes = [8, 128], strides = [1, 1]} : vector<8x384xf32> to vector<8x128xf32>
    %122 = vector.extract_strided_slice %112 {offsets = [0, 128], sizes = [8, 128], strides = [1, 1]} : vector<8x256xf32> to vector<8x128xf32>
    %123 = arith.addf %121, %122 : vector<8x128xf32>
    %124 = arith.negf %123 : vector<8x128xf32>
    %125 = math.exp %124 : vector<8x128xf32>
    %cst_58 = arith.constant 1.000000e+00 : f32
    %126 = vector.broadcast %cst_58 : f32 to vector<8x128xf32>
    %127 = arith.addf %126, %125 : vector<8x128xf32>
    %128 = arith.divf %126, %127 : vector<8x128xf32>
    %129 = vector.extract_strided_slice %110 {offsets = [0, 256], sizes = [8, 128], strides = [1, 1]} : vector<8x384xf32> to vector<8x128xf32>
    %130 = arith.mulf %120, %105 : vector<8x128xf32>
    %c0_59 = arith.constant 0 : index
    %c0_60 = arith.constant 0 : index
    %131 = vector.load %arg5[%c0_59, %c0_60] : memref<128x128xf32, #tpu.memory_space<vmem>>, vector<128x128xf32>
    %cst_61 = arith.constant dense<0.000000e+00> : vector<8x128xf32>
    %132 = tpu.matmul %130, %131, %cst_61 {dimension_numbers = #tpu.dot_dimension_numbers<[1], [0], [0], [1], [0, 0, 1, 1], [], []>} : vector<8x128xf32>, vector<128x128xf32>, vector<8x128xf32> -> vector<8x128xf32>
    %133 = arith.addf %129, %132 : vector<8x128xf32>
    %134 = math.tanh %133 : vector<8x128xf32>
    %135 = arith.subf %105, %134 : vector<8x128xf32>
    %136 = arith.mulf %128, %135 : vector<8x128xf32>
    %137 = arith.addf %134, %136 : vector<8x128xf32>
    %c3_62 = arith.constant 3 : index
    %c0_63 = arith.constant 0 : index
    %c0_64 = arith.constant 0 : index
    %138 = vector.load %arg7[%c3_62, %c0_63, %c0_64] : memref<8x8x128xf32, #tpu.memory_space<vmem>>, vector<1x8x128xf32>
    %139 = vector.shape_cast %138 : vector<1x8x128xf32> to vector<8x128xf32>
    %140 = vector.shape_cast %137 : vector<8x128xf32> to vector<1x8x128xf32>
    tpu.vector_store %arg7[%c3_62, %c0_63, %c0_64], %140 {strides = array<i32>} : memref<8x8x128xf32, #tpu.memory_space<vmem>>, vector<1x8x128xf32>,
    %c4 = arith.constant 4 : index
    %c0_65 = arith.constant 0 : index
    %c0_66 = arith.constant 0 : index
    %141 = vector.load %arg9[%c4, %c0_65, %c0_66] : memref<8x8x384xf32, #tpu.memory_space<vmem>>, vector<1x8x384xf32>
    %142 = vector.shape_cast %141 : vector<1x8x384xf32> to vector<8x384xf32>
    %c0_67 = arith.constant 0 : index
    %c0_68 = arith.constant 0 : index
    %143 = vector.load %arg4[%c0_67, %c0_68] : memref<128x256xf32, #tpu.memory_space<vmem>>, vector<128x256xf32>
    %cst_69 = arith.constant dense<0.000000e+00> : vector<8x256xf32>
    %144 = tpu.matmul %137, %143, %cst_69 {dimension_numbers = #tpu.dot_dimension_numbers<[1], [0], [0], [1], [0, 0, 1, 1], [], []>} : vector<8x128xf32>, vector<128x256xf32>, vector<8x256xf32> -> vector<8x256xf32>
    %145 = vector.extract_strided_slice %142 {offsets = [0, 0], sizes = [8, 128], strides = [1, 1]} : vector<8x384xf32> to vector<8x128xf32>
    %146 = vector.extract_strided_slice %144 {offsets = [0, 0], sizes = [8, 128], strides = [1, 1]} : vector<8x256xf32> to vector<8x128xf32>
    %147 = arith.addf %145, %146 : vector<8x128xf32>
    %148 = arith.negf %147 : vector<8x128xf32>
    %149 = math.exp %148 : vector<8x128xf32>
    %cst_70 = arith.constant 1.000000e+00 : f32
    %150 = vector.broadcast %cst_70 : f32 to vector<8x128xf32>
    %151 = arith.addf %150, %149 : vector<8x128xf32>
    %152 = arith.divf %150, %151 : vector<8x128xf32>
    %153 = vector.extract_strided_slice %142 {offsets = [0, 128], sizes = [8, 128], strides = [1, 1]} : vector<8x384xf32> to vector<8x128xf32>
    %154 = vector.extract_strided_slice %144 {offsets = [0, 128], sizes = [8, 128], strides = [1, 1]} : vector<8x256xf32> to vector<8x128xf32>
    %155 = arith.addf %153, %154 : vector<8x128xf32>
    %156 = arith.negf %155 : vector<8x128xf32>
    %157 = math.exp %156 : vector<8x128xf32>
    %cst_71 = arith.constant 1.000000e+00 : f32
    %158 = vector.broadcast %cst_71 : f32 to vector<8x128xf32>
    %159 = arith.addf %158, %157 : vector<8x128xf32>
    %160 = arith.divf %158, %159 : vector<8x128xf32>
    %161 = vector.extract_strided_slice %142 {offsets = [0, 256], sizes = [8, 128], strides = [1, 1]} : vector<8x384xf32> to vector<8x128xf32>
    %162 = arith.mulf %152, %137 : vector<8x128xf32>
    %c0_72 = arith.constant 0 : index
    %c0_73 = arith.constant 0 : index
    %163 = vector.load %arg5[%c0_72, %c0_73] : memref<128x128xf32, #tpu.memory_space<vmem>>, vector<128x128xf32>
    %cst_74 = arith.constant dense<0.000000e+00> : vector<8x128xf32>
    %164 = tpu.matmul %162, %163, %cst_74 {dimension_numbers = #tpu.dot_dimension_numbers<[1], [0], [0], [1], [0, 0, 1, 1], [], []>} : vector<8x128xf32>, vector<128x128xf32>, vector<8x128xf32> -> vector<8x128xf32>
    %165 = arith.addf %161, %164 : vector<8x128xf32>
    %166 = math.tanh %165 : vector<8x128xf32>
    %167 = arith.subf %137, %166 : vector<8x128xf32>
    %168 = arith.mulf %160, %167 : vector<8x128xf32>
    %169 = arith.addf %166, %168 : vector<8x128xf32>
    %c4_75 = arith.constant 4 : index
    %c0_76 = arith.constant 0 : index
    %c0_77 = arith.constant 0 : index
    %170 = vector.load %arg7[%c4_75, %c0_76, %c0_77] : memref<8x8x128xf32, #tpu.memory_space<vmem>>, vector<1x8x128xf32>
    %171 = vector.shape_cast %170 : vector<1x8x128xf32> to vector<8x128xf32>
    %172 = vector.shape_cast %169 : vector<8x128xf32> to vector<1x8x128xf32>
    tpu.vector_store %arg7[%c4_75, %c0_76, %c0_77], %172 {strides = array<i32>} : memref<8x8x128xf32, #tpu.memory_space<vmem>>, vector<1x8x128xf32>,
    %c5 = arith.constant 5 : index
    %c0_78 = arith.constant 0 : index
    %c0_79 = arith.constant 0 : index
    %173 = vector.load %arg9[%c5, %c0_78, %c0_79] : memref<8x8x384xf32, #tpu.memory_space<vmem>>, vector<1x8x384xf32>
    %174 = vector.shape_cast %173 : vector<1x8x384xf32> to vector<8x384xf32>
    %c0_80 = arith.constant 0 : index
    %c0_81 = arith.constant 0 : index
    %175 = vector.load %arg4[%c0_80, %c0_81] : memref<128x256xf32, #tpu.memory_space<vmem>>, vector<128x256xf32>
    %cst_82 = arith.constant dense<0.000000e+00> : vector<8x256xf32>
    %176 = tpu.matmul %169, %175, %cst_82 {dimension_numbers = #tpu.dot_dimension_numbers<[1], [0], [0], [1], [0, 0, 1, 1], [], []>} : vector<8x128xf32>, vector<128x256xf32>, vector<8x256xf32> -> vector<8x256xf32>
    %177 = vector.extract_strided_slice %174 {offsets = [0, 0], sizes = [8, 128], strides = [1, 1]} : vector<8x384xf32> to vector<8x128xf32>
    %178 = vector.extract_strided_slice %176 {offsets = [0, 0], sizes = [8, 128], strides = [1, 1]} : vector<8x256xf32> to vector<8x128xf32>
    %179 = arith.addf %177, %178 : vector<8x128xf32>
    %180 = arith.negf %179 : vector<8x128xf32>
    %181 = math.exp %180 : vector<8x128xf32>
    %cst_83 = arith.constant 1.000000e+00 : f32
    %182 = vector.broadcast %cst_83 : f32 to vector<8x128xf32>
    %183 = arith.addf %182, %181 : vector<8x128xf32>
    %184 = arith.divf %182, %183 : vector<8x128xf32>
    %185 = vector.extract_strided_slice %174 {offsets = [0, 128], sizes = [8, 128], strides = [1, 1]} : vector<8x384xf32> to vector<8x128xf32>
    %186 = vector.extract_strided_slice %176 {offsets = [0, 128], sizes = [8, 128], strides = [1, 1]} : vector<8x256xf32> to vector<8x128xf32>
    %187 = arith.addf %185, %186 : vector<8x128xf32>
    %188 = arith.negf %187 : vector<8x128xf32>
    %189 = math.exp %188 : vector<8x128xf32>
    %cst_84 = arith.constant 1.000000e+00 : f32
    %190 = vector.broadcast %cst_84 : f32 to vector<8x128xf32>
    %191 = arith.addf %190, %189 : vector<8x128xf32>
    %192 = arith.divf %190, %191 : vector<8x128xf32>
    %193 = vector.extract_strided_slice %174 {offsets = [0, 256], sizes = [8, 128], strides = [1, 1]} : vector<8x384xf32> to vector<8x128xf32>
    %194 = arith.mulf %184, %169 : vector<8x128xf32>
    %c0_85 = arith.constant 0 : index
    %c0_86 = arith.constant 0 : index
    %195 = vector.load %arg5[%c0_85, %c0_86] : memref<128x128xf32, #tpu.memory_space<vmem>>, vector<128x128xf32>
    %cst_87 = arith.constant dense<0.000000e+00> : vector<8x128xf32>
    %196 = tpu.matmul %194, %195, %cst_87 {dimension_numbers = #tpu.dot_dimension_numbers<[1], [0], [0], [1], [0, 0, 1, 1], [], []>} : vector<8x128xf32>, vector<128x128xf32>, vector<8x128xf32> -> vector<8x128xf32>
    %197 = arith.addf %193, %196 : vector<8x128xf32>
    %198 = math.tanh %197 : vector<8x128xf32>
    %199 = arith.subf %169, %198 : vector<8x128xf32>
    %200 = arith.mulf %192, %199 : vector<8x128xf32>
    %201 = arith.addf %198, %200 : vector<8x128xf32>
    %c5_88 = arith.constant 5 : index
    %c0_89 = arith.constant 0 : index
    %c0_90 = arith.constant 0 : index
    %202 = vector.load %arg7[%c5_88, %c0_89, %c0_90] : memref<8x8x128xf32, #tpu.memory_space<vmem>>, vector<1x8x128xf32>
    %203 = vector.shape_cast %202 : vector<1x8x128xf32> to vector<8x128xf32>
    %204 = vector.shape_cast %201 : vector<8x128xf32> to vector<1x8x128xf32>
    tpu.vector_store %arg7[%c5_88, %c0_89, %c0_90], %204 {strides = array<i32>} : memref<8x8x128xf32, #tpu.memory_space<vmem>>, vector<1x8x128xf32>,
    %c6 = arith.constant 6 : index
    %c0_91 = arith.constant 0 : index
    %c0_92 = arith.constant 0 : index
    %205 = vector.load %arg9[%c6, %c0_91, %c0_92] : memref<8x8x384xf32, #tpu.memory_space<vmem>>, vector<1x8x384xf32>
    %206 = vector.shape_cast %205 : vector<1x8x384xf32> to vector<8x384xf32>
    %c0_93 = arith.constant 0 : index
    %c0_94 = arith.constant 0 : index
    %207 = vector.load %arg4[%c0_93, %c0_94] : memref<128x256xf32, #tpu.memory_space<vmem>>, vector<128x256xf32>
    %cst_95 = arith.constant dense<0.000000e+00> : vector<8x256xf32>
    %208 = tpu.matmul %201, %207, %cst_95 {dimension_numbers = #tpu.dot_dimension_numbers<[1], [0], [0], [1], [0, 0, 1, 1], [], []>} : vector<8x128xf32>, vector<128x256xf32>, vector<8x256xf32> -> vector<8x256xf32>
    %209 = vector.extract_strided_slice %206 {offsets = [0, 0], sizes = [8, 128], strides = [1, 1]} : vector<8x384xf32> to vector<8x128xf32>
    %210 = vector.extract_strided_slice %208 {offsets = [0, 0], sizes = [8, 128], strides = [1, 1]} : vector<8x256xf32> to vector<8x128xf32>
    %211 = arith.addf %209, %210 : vector<8x128xf32>
    %212 = arith.negf %211 : vector<8x128xf32>
    %213 = math.exp %212 : vector<8x128xf32>
    %cst_96 = arith.constant 1.000000e+00 : f32
    %214 = vector.broadcast %cst_96 : f32 to vector<8x128xf32>
    %215 = arith.addf %214, %213 : vector<8x128xf32>
    %216 = arith.divf %214, %215 : vector<8x128xf32>
    %217 = vector.extract_strided_slice %206 {offsets = [0, 128], sizes = [8, 128], strides = [1, 1]} : vector<8x384xf32> to vector<8x128xf32>
    %218 = vector.extract_strided_slice %208 {offsets = [0, 128], sizes = [8, 128], strides = [1, 1]} : vector<8x256xf32> to vector<8x128xf32>
    %219 = arith.addf %217, %218 : vector<8x128xf32>
    %220 = arith.negf %219 : vector<8x128xf32>
    %221 = math.exp %220 : vector<8x128xf32>
    %cst_97 = arith.constant 1.000000e+00 : f32
    %222 = vector.broadcast %cst_97 : f32 to vector<8x128xf32>
    %223 = arith.addf %222, %221 : vector<8x128xf32>
    %224 = arith.divf %222, %223 : vector<8x128xf32>
    %225 = vector.extract_strided_slice %206 {offsets = [0, 256], sizes = [8, 128], strides = [1, 1]} : vector<8x384xf32> to vector<8x128xf32>
    %226 = arith.mulf %216, %201 : vector<8x128xf32>
    %c0_98 = arith.constant 0 : index
    %c0_99 = arith.constant 0 : index
    %227 = vector.load %arg5[%c0_98, %c0_99] : memref<128x128xf32, #tpu.memory_space<vmem>>, vector<128x128xf32>
    %cst_100 = arith.constant dense<0.000000e+00> : vector<8x128xf32>
    %228 = tpu.matmul %226, %227, %cst_100 {dimension_numbers = #tpu.dot_dimension_numbers<[1], [0], [0], [1], [0, 0, 1, 1], [], []>} : vector<8x128xf32>, vector<128x128xf32>, vector<8x128xf32> -> vector<8x128xf32>
    %229 = arith.addf %225, %228 : vector<8x128xf32>
    %230 = math.tanh %229 : vector<8x128xf32>
    %231 = arith.subf %201, %230 : vector<8x128xf32>
    %232 = arith.mulf %224, %231 : vector<8x128xf32>
    %233 = arith.addf %230, %232 : vector<8x128xf32>
    %c6_101 = arith.constant 6 : index
    %c0_102 = arith.constant 0 : index
    %c0_103 = arith.constant 0 : index
    %234 = vector.load %arg7[%c6_101, %c0_102, %c0_103] : memref<8x8x128xf32, #tpu.memory_space<vmem>>, vector<1x8x128xf32>
    %235 = vector.shape_cast %234 : vector<1x8x128xf32> to vector<8x128xf32>
    %236 = vector.shape_cast %233 : vector<8x128xf32> to vector<1x8x128xf32>
    tpu.vector_store %arg7[%c6_101, %c0_102, %c0_103], %236 {strides = array<i32>} : memref<8x8x128xf32, #tpu.memory_space<vmem>>, vector<1x8x128xf32>,
    %c7 = arith.constant 7 : index
    %c0_104 = arith.constant 0 : index
    %c0_105 = arith.constant 0 : index
    %237 = vector.load %arg9[%c7, %c0_104, %c0_105] : memref<8x8x384xf32, #tpu.memory_space<vmem>>, vector<1x8x384xf32>
    %238 = vector.shape_cast %237 : vector<1x8x384xf32> to vector<8x384xf32>
    %c0_106 = arith.constant 0 : index
    %c0_107 = arith.constant 0 : index
    %239 = vector.load %arg4[%c0_106, %c0_107] : memref<128x256xf32, #tpu.memory_space<vmem>>, vector<128x256xf32>
    %cst_108 = arith.constant dense<0.000000e+00> : vector<8x256xf32>
    %240 = tpu.matmul %233, %239, %cst_108 {dimension_numbers = #tpu.dot_dimension_numbers<[1], [0], [0], [1], [0, 0, 1, 1], [], []>} : vector<8x128xf32>, vector<128x256xf32>, vector<8x256xf32> -> vector<8x256xf32>
    %241 = vector.extract_strided_slice %238 {offsets = [0, 0], sizes = [8, 128], strides = [1, 1]} : vector<8x384xf32> to vector<8x128xf32>
    %242 = vector.extract_strided_slice %240 {offsets = [0, 0], sizes = [8, 128], strides = [1, 1]} : vector<8x256xf32> to vector<8x128xf32>
    %243 = arith.addf %241, %242 : vector<8x128xf32>
    %244 = arith.negf %243 : vector<8x128xf32>
    %245 = math.exp %244 : vector<8x128xf32>
    %cst_109 = arith.constant 1.000000e+00 : f32
    %246 = vector.broadcast %cst_109 : f32 to vector<8x128xf32>
    %247 = arith.addf %246, %245 : vector<8x128xf32>
    %248 = arith.divf %246, %247 : vector<8x128xf32>
    %249 = vector.extract_strided_slice %238 {offsets = [0, 128], sizes = [8, 128], strides = [1, 1]} : vector<8x384xf32> to vector<8x128xf32>
    %250 = vector.extract_strided_slice %240 {offsets = [0, 128], sizes = [8, 128], strides = [1, 1]} : vector<8x256xf32> to vector<8x128xf32>
    %251 = arith.addf %249, %250 : vector<8x128xf32>
    %252 = arith.negf %251 : vector<8x128xf32>
    %253 = math.exp %252 : vector<8x128xf32>
    %cst_110 = arith.constant 1.000000e+00 : f32
    %254 = vector.broadcast %cst_110 : f32 to vector<8x128xf32>
    %255 = arith.addf %254, %253 : vector<8x128xf32>
    %256 = arith.divf %254, %255 : vector<8x128xf32>
    %257 = vector.extract_strided_slice %238 {offsets = [0, 256], sizes = [8, 128], strides = [1, 1]} : vector<8x384xf32> to vector<8x128xf32>
    %258 = arith.mulf %248, %233 : vector<8x128xf32>
    %c0_111 = arith.constant 0 : index
    %c0_112 = arith.constant 0 : index
    %259 = vector.load %arg5[%c0_111, %c0_112] : memref<128x128xf32, #tpu.memory_space<vmem>>, vector<128x128xf32>
    %cst_113 = arith.constant dense<0.000000e+00> : vector<8x128xf32>
    %260 = tpu.matmul %258, %259, %cst_113 {dimension_numbers = #tpu.dot_dimension_numbers<[1], [0], [0], [1], [0, 0, 1, 1], [], []>} : vector<8x128xf32>, vector<128x128xf32>, vector<8x128xf32> -> vector<8x128xf32>
    %261 = arith.addf %257, %260 : vector<8x128xf32>
    %262 = math.tanh %261 : vector<8x128xf32>
    %263 = arith.subf %233, %262 : vector<8x128xf32>
    %264 = arith.mulf %256, %263 : vector<8x128xf32>
    %265 = arith.addf %262, %264 : vector<8x128xf32>
    %c7_114 = arith.constant 7 : index
    %c0_115 = arith.constant 0 : index
    %c0_116 = arith.constant 0 : index
    %266 = vector.load %arg7[%c7_114, %c0_115, %c0_116] : memref<8x8x128xf32, #tpu.memory_space<vmem>>, vector<1x8x128xf32>
    %267 = vector.shape_cast %266 : vector<1x8x128xf32> to vector<8x128xf32>
    %268 = vector.shape_cast %265 : vector<8x128xf32> to vector<1x8x128xf32>
    tpu.vector_store %arg7[%c7_114, %c0_115, %c0_116], %268 {strides = array<i32>} : memref<8x8x128xf32, #tpu.memory_space<vmem>>, vector<1x8x128xf32>,
    %c0_117 = arith.constant 0 : index
    %c0_118 = arith.constant 0 : index
    %269 = vector.load %arg8[%c0_117, %c0_118] : memref<8x128xf32, #tpu.memory_space<vmem>>, vector<8x128xf32>
    tpu.vector_store %arg8[%c0_117, %c0_118], %265 {strides = array<i32>} : memref<8x128xf32, #tpu.memory_space<vmem>>, vector<8x128xf32>,
    return
  }
  func.func @transform_0(%arg0: i32) -> (i32, i32, i32) {
    %c0_i32 = arith.constant 0 : i32
    %c0_i32_0 = arith.constant 0 : i32
    %c0_i32_1 = arith.constant 0 : i32
    return %arg0, %c0_i32, %c0_i32_0 : i32, i32, i32
  }
  func.func @transform_1(%arg0: i32) -> (i32, i32) {
    %c0_i32 = arith.constant 0 : i32
    %c0_i32_0 = arith.constant 0 : i32
    %c0_i32_1 = arith.constant 0 : i32
    return %c0_i32, %c0_i32_0 : i32, i32
  }
  func.func @transform_2(%arg0: i32) -> (i32, i32) {
    %c0_i32 = arith.constant 0 : i32
    %c0_i32_0 = arith.constant 0 : i32
    %c0_i32_1 = arith.constant 0 : i32
    return %c0_i32, %c0_i32_0 : i32, i32
  }
  func.func @transform_3(%arg0: i32) -> (i32, i32) {
    %c0_i32 = arith.constant 0 : i32
    %c0_i32_0 = arith.constant 0 : i32
    %c0_i32_1 = arith.constant 0 : i32
    return %c0_i32, %c0_i32_0 : i32, i32
  }
  func.func @transform_4(%arg0: i32) -> (i32, i32) {
    %c0_i32 = arith.constant 0 : i32
    %c0_i32_0 = arith.constant 0 : i32
    %c0_i32_1 = arith.constant 0 : i32
    return %c0_i32, %c0_i32_0 : i32, i32
  }
  func.func @transform_5(%arg0: i32) -> (i32, i32) {
    %c0_i32 = arith.constant 0 : i32
    %c0_i32_0 = arith.constant 0 : i32
    %c0_i32_1 = arith.constant 0 : i32
    return %c0_i32, %c0_i32_0 : i32, i32
  }
  func.func @transform_6(%arg0: i32) -> (i32, i32, i32) {
    %c0_i32 = arith.constant 0 : i32
    %c0_i32_0 = arith.constant 0 : i32
    %c0_i32_1 = arith.constant 0 : i32
    return %arg0, %c0_i32, %c0_i32_0 : i32, i32, i32
  }
}

</mosaic_0001>

<bundles_post_ra>
// kernel: tpu_custom_call.1
= control target key start
LH: loop header
LB: loop body
LE: loop exit
PB: predicated region body
PF: predicated region fallthrough
CT: control target
= control target key end

     0   :  { %11 = vsyncpa [#allocation5], 0  ;;  %s3929_s0 = inlined_call_operand.hbm [shape: f32[8,8,16], index: 0, kind: input, shape index: {}]   ;;  %s3930_s1 = inlined_call_operand.hbm [shape: f32[8,128], index: 1, kind: input, shape index: {}]   ;;  %s3931_s2 = inlined_call_operand.hbm [shape: f32[16,384], index: 2, kind: input, shape index: {}]   ;;  %s3932_s3 = inlined_call_operand.hbm [shape: f32[128,256], index: 3, kind: input, shape index: {}]   ;;  %s3933_s4 = inlined_call_operand.hbm [shape: f32[128,128], index: 4, kind: input, shape index: {}]   ;;  %s3934_s5 = inlined_call_operand.vmem [shape: f32[1,384], index: 5, kind: input, shape index: {}]   ;;  %s3935_s6 = inlined_call_operand.hbm [shape: f32[8,8,128], index: 6, kind: output, shape index: {}]  }
   0x1   :  { %12 = vsyncpa [#allocation8], 0 }
   0x2   :  { %13 = vsyncpa [#allocation11], 0 }
   0x3   :  { %14 = vsyncpa [#allocation6], 0  ;;  %s3330_s21 = smov [#allocation7]   ;;  %s3331_s23 = smov [#allocation10]  }
   0x4   :  { %s33_s22 = sshll.u32 %s3330_s21, 4  ;;  %s54_s24 = sshll.u32 %s3331_s23, 4  ;;  %s34_s22 = int_to_ptr.vmem [resolvable:$true] %s33_s22  ;;  %s3380_s24 = int_to_ptr.vmem [resolvable:$true] %s54_s24 }
   0x5   :  { %s3190_s27 = scalar_lea.hbm %s3930_s1, 128 }
   0x6   :  { %p3191_p0 = scmp.ne.s32.totalorder %s3930_s1, %s3190_s27  ;;  %p3194_p1 = scmp.lt.u32.totalorder %s3190_s27, %s3930_s1 }
   0x8   :  { %p3196_p2 = pnand %p3194_p1, %p3191_p0 }
   0xa   :  { %3199 = shalt.err (!%p3196_p2)
}
   0xb   :  { %s3200_s8 = scalar_lea.vmem %s34_s22, 128  ;;  %p3205_p4 = scmp.lt.s32.totalorder %s34_s22, %s34_s22 }
   0xc   :  { %p3201_p3 = scmp.ne.s32.totalorder %s34_s22, %s3200_s8  ;;  %p3206_p5 = scmp.lt.s32.totalorder %s3200_s8, %s3200_s8 }
   0xe   :  { %p3207_p6 = por %p3206_p5, %p3205_p4 }
  0x10   :  { %p3208_p7 = pnand %p3207_p6, %p3201_p3 }
  0x12   :  { %3211 = shalt.err (!%p3208_p7)
}
  0x13   :  { %36 = dma.hbm_to_vmem [thread:$0]  %s3930_s1, 128, %s34_s22, [#allocation8]  }
  0x14   :  { %s3212_s13 = scalar_lea.hbm %s3932_s3, 4096 }
  0x15   :  { %p3213_p8 = scmp.ne.s32.totalorder %s3932_s3, %s3212_s13  ;;  %p3216_p9 = scmp.lt.u32.totalorder %s3212_s13, %s3932_s3 }
  0x17   :  { %p3218_p10 = pnand %p3216_p9, %p3213_p8 }
  0x19   :  { %3221 = shalt.err (!%p3218_p10)
}
  0x1a   :  { %s3222_s18 = scalar_lea.vmem %s3380_s24, 4096  ;;  %p3227_p12 = scmp.lt.s32.totalorder %s3380_s24, %s3380_s24 }
  0x1b   :  { %p3223_p11 = scmp.ne.s32.totalorder %s3380_s24, %s3222_s18  ;;  %p3228_p13 = scmp.lt.s32.totalorder %s3222_s18, %s3222_s18 }
  0x1d   :  { %p3229_p0 = por %p3228_p13, %p3227_p12 }
  0x1f   :  { %p3230_p1 = pnand %p3229_p0, %p3223_p11 }
  0x21   :  { %3233 = shalt.err (!%p3230_p1)
}
  0x22   :  { %s3332_s1 = smov 256   ;;  %s3333_s19 = smov 16  }
  0x23   :  { %60 = dma.hbm_to_vmem [thread:$0]  %s3932_s3, 4096, %s3380_s24, [#allocation11], %s3332_s1, %s3332_s1, %s3333_s19  }
  0x24   :  { %s3334_s22 = smov [#allocation4]   ;;  %s3234_s27 = scalar_lea.hbm %s3929_s0, 1024 }
  0x25   :  { %s20_s23 = sshll.u32 %s3334_s22, 4  ;;  %p3235_p2 = scmp.ne.s32.totalorder %s3929_s0, %s3234_s27  ;;  %s21_s23 = int_to_ptr.vmem [resolvable:$true] %s20_s23 }
  0x26   :  { %p3238_p3 = scmp.lt.u32.totalorder %s3234_s27, %s3929_s0 }
  0x28   :  { %p3240_p4 = pnand %p3238_p3, %p3235_p2 }
  0x2a   :  { %3243 = shalt.err (!%p3240_p4)
}
  0x2b   :  { %s3244_s8 = scalar_lea.vmem %s21_s23, 1024  ;;  %p3249_p6 = scmp.lt.s32.totalorder %s21_s23, %s21_s23 }
  0x2c   :  { %p3245_p5 = scmp.ne.s32.totalorder %s21_s23, %s3244_s8  ;;  %p3250_p7 = scmp.lt.s32.totalorder %s3244_s8, %s3244_s8 }
  0x2e   :  { %p3251_p8 = por %p3250_p7, %p3249_p6 }
  0x30   :  { %p3252_p9 = pnand %p3251_p8, %p3245_p5 }
  0x32   :  { %3255 = shalt.err (!%p3252_p9)
}
  0x33   :  { %s3335_s3 = smov 128   ;;  %s3336_s24 = smov 8  }
  0x34   :  { %26 = dma.hbm_to_vmem [thread:$0]  %s3929_s0, 1024, %s21_s23, [#allocation5], %s3335_s3, %s3335_s3, %s3336_s24  }
  0x35   :  { %s3337_s11 = smov [#allocation9]   ;;  %s3256_s15 = scalar_lea.hbm %s3931_s2, 768 }
  0x36   :  { %s42_s12 = sshll.u32 %s3337_s11, 4  ;;  %p3257_p10 = scmp.ne.s32.totalorder %s3931_s2, %s3256_s15  ;;  %s43_s12 = int_to_ptr.vmem [resolvable:$true] %s42_s12 }
  0x37   :  { %p3260_p11 = scmp.lt.u32.totalorder %s3256_s15, %s3931_s2 }
  0x39   :  { %p3262_p12 = pnand %p3260_p11, %p3257_p10 }
  0x3b   :  { %3265 = shalt.err (!%p3262_p12)
}
  0x3c   :  { %s3266_s19 = scalar_lea.vmem %s43_s12, 768  ;;  %p3271_p0 = scmp.lt.s32.totalorder %s43_s12, %s43_s12 }
  0x3d   :  { %p3267_p13 = scmp.ne.s32.totalorder %s43_s12, %s3266_s19  ;;  %p3272_p1 = scmp.lt.s32.totalorder %s3266_s19, %s3266_s19 }
  0x3f   :  { %p3273_p2 = por %p3272_p1, %p3271_p0 }
  0x41   :  { %p3274_p3 = pnand %p3273_p2, %p3267_p13 }
  0x43   :  { %3277 = shalt.err (!%p3274_p3)
}
  0x44   :  { %s3338_s0 = smov 384   ;;  %s3339_s20 = smov 24  }
  0x45   :  { %48 = dma.hbm_to_vmem [thread:$0]  %s3931_s2, 768, %s43_s12, [#allocation8], %s3338_s0, %s3338_s0, %s3339_s20  }
  0x46   :  { %s3340_s23 = smov [#allocation12]   ;;  %s3278_s28 = scalar_lea.hbm %s3933_s4, 2048 }
  0x47   :  { %s66_s25 = sshll.u32 %s3340_s23, 4  ;;  %p3279_p4 = scmp.ne.s32.totalorder %s3933_s4, %s3278_s28  ;;  %s67_s25 = int_to_ptr.vmem [resolvable:$true] %s66_s25 }
  0x48   :  { %p3282_p5 = scmp.lt.u32.totalorder %s3278_s28, %s3933_s4 }
  0x4a   :  { %p3284_p6 = pnand %p3282_p5, %p3279_p4 }
  0x4c   :  { %3287 = shalt.err (!%p3284_p6)
}
  0x4d   :  { %s3288_s9 = scalar_lea.vmem %s67_s25, 2048  ;;  %p3293_p8 = scmp.lt.s32.totalorder %s67_s25, %s67_s25 }
  0x4e   :  { %p3289_p7 = scmp.ne.s32.totalorder %s67_s25, %s3288_s9  ;;  %p3294_p9 = scmp.lt.s32.totalorder %s3288_s9, %s3288_s9 }
  0x50   :  { %p3295_p10 = por %p3294_p9, %p3293_p8 }
  0x52   :  { %p3296_p11 = pnand %p3295_p10, %p3289_p7 }
  0x54   :  { %3299 = shalt.err (!%p3296_p11)
}
  0x55   :  { %72 = dma.hbm_to_vmem [thread:$0]  %s3933_s4, 2048, %s67_s25, [#allocation11], %s3335_s3, %s3335_s3, %s3336_s24  }
  0x56   :  { %3322 = dma.done.wait [#allocation5], 1024  }
  0x57   :  { %3323 = vsyncadd [#allocation5], 4294966272 }
  0x58   :  { %3324 = dma.done.wait [#allocation8], 896  }
  0x59   :  { %3325 = vsyncadd [#allocation8], 4294966400 }
  0x5a   :  { %3326 = dma.done.wait [#allocation11], 6144  }
  0x5b   :  { %3327 = vsyncadd [#allocation11], 4294961152  ;;  %v3341_v0 = vmov 0.0   ;;  %v105_v1 = vld [vmem:[#allocation9 + $0x8] sm:$0xff]  ;;  %v108_v2 = vld [vmem:[#allocation9 + $0x20] sm:$0xff]  ;;  %vm127_vm0 = vcmask 130048  }
  0x5c   :  { %216 = vmatprep.mubr.f32.mxu0 %v3341_v0  ;;  %v104_v3 = vld [vmem:[#allocation9] sm:$0xff]  ;;  %v2607_v4 = vpack.c.bf16 %v108_v2, %v105_v1  ;;  %v107_v5 = vld [vmem:[#allocation9 + $0x18] sm:$0xff]  ;;  %v401_v9 = vld [vmem:[#allocation10 + $0x18] sm:$0xff]  ;;  %v3342_v50 = vmov 0.0|0.0   ;;  %vm3343_vm1 = vmmov 0  }
  0x5d   :  { %v96_v6 = vld [vmem:[#allocation4] sm:$0xff]  ;;  %v2609_v8 = vpack.c.bf16 %v107_v5, %v104_v3  ;;  %v398_v10 = vld [vmem:[#allocation10] sm:$0xff]  ;;  %v400_v11 = vld [vmem:[#allocation10 + $0x10] sm:$0xff] }
  0x5e   :  { %v399_v7 = vld [vmem:[#allocation10 + $0x8] sm:$0xff]  ;;  %2315 = vmatprep.mubr.msk.f32.mxu1 %vm127_vm0, %v96_v6  ;;  %2608 = vmatprep.subr.bf16.mxu0 %v2607_v4  ;;  %v405_v14 = vld [vmem:[#allocation10 + $0x38] sm:$0xff]  ;;  %v3457_v15 = vpack.c.bf16 %v400_v11, %v398_v10  ;;  %v402_v17 = vld [vmem:[#allocation10 + $0x20] sm:$0xff] }
  0x5f   :  { %v3455_v12 = vpack.c.bf16 %v401_v9, %v399_v7  ;;  %v403_v13 = vld [vmem:[#allocation10 + $0x28] sm:$0xff]  ;;  %2610 = vmatpush1.bf16.msra.mxu0 %v2609_v8  ;;  %v404_v18 = vld [vmem:[#allocation10 + $0x30] sm:$0xff]  ;;  %v409_v20 = vld [vmem:[#allocation10 + $0x58] sm:$0xff] }
  0x60   :  { %v3460_v16 = vpack.c.bf16 %v405_v14, %v403_v13  ;;  %v407_v19 = vld [vmem:[#allocation10 + $0x48] sm:$0xff]  ;;  %v97_v21 = vld [vmem:[#allocation4 + $0x8] sm:$0xff]  ;;  %v3465_v22 = vpack.c.bf16 %v404_v18, %v402_v17  ;;  %v406_v24 = vld [vmem:[#allocation10 + $0x40] sm:$0xff] }
  0x61   :  { %2616 = vmatprep.subr.bf16.mxu0 %v3455_v12  ;;  %v3468_v23 = vpack.c.bf16 %v409_v20, %v407_v19  ;;  %v408_v25 = vld [vmem:[#allocation10 + $0x50] sm:$0xff]  ;;  %v411_v26 = vld [vmem:[#allocation10 + $0x68] sm:$0xff]  ;;  %v413_v27 = vld [vmem:[#allocation10 + $0x78] sm:$0xff] }
  0x62   :  { %2133 = vmatmul.mubr.msk.f32.vlgmr.msra.gmra.mrb[0].mxu0 %vm127_vm0, %v96_v6  ;;  %v98_v28 = vld [vmem:[#allocation4 + $0x10] sm:$0xff]  ;;  %v3473_v29 = vpack.c.bf16 %v408_v25, %v406_v24  ;;  %v3476_v30 = vpack.c.bf16 %v413_v27, %v411_v26  ;;  %v410_v31 = vld [vmem:[#allocation10 + $0x60] sm:$0xff]  ;;  %v412_v32 = vld [vmem:[#allocation10 + $0x70] sm:$0xff] }
  0x63   :  { %2618 = vmatpush1.bf16.msra.mxu0 %v3457_v15  ;;  %222 = vmatprep.mubr.f32.mxu0 %v3341_v0  ;;  %v415_v33 = vld [vmem:[#allocation10 + $0x88] sm:$0xff]  ;;  %v417_v34 = vld [vmem:[#allocation10 + $0x98] sm:$0xff]  ;;  %v106_v35 = vld [vmem:[#allocation9 + $0x10] sm:$0xff]  ;;  %v3481_v38 = vpack.c.bf16 %v412_v32, %v410_v31 }
  0x64   :  { %2620 = vmatprep.subr.bf16.mxu0 %v3460_v16  ;;  %v109_v36 = vld [vmem:[#allocation9 + $0x28] sm:$0xff]  ;;  %v99_v37 = vld [vmem:[#allocation4 + $0x18] sm:$0xff]  ;;  %v3484_v40 = vpack.c.bf16 %v417_v34, %v415_v33  ;;  %v416_v42 = vld [vmem:[#allocation10 + $0x90] sm:$0xff] }
  0x65   :  { %v2611_v39 = vpack.c.bf16 %v109_v36, %v106_v35  ;;  %v414_v41 = vld [vmem:[#allocation10 + $0x80] sm:$0xff]  ;;  %v419_v43 = vld [vmem:[#allocation10 + $0xa8] sm:$0xff]  ;;  %v421_v44 = vld [vmem:[#allocation10 + $0xb8] sm:$0xff]  ;;  %v112_v36 = vlaneseq }
  0x66   :  { %2134 = vmatmul.mubr.msk.f32.gmra.mrb[2].mxu0 %vm127_vm0, %v97_v21  ;;  %v100_v45 = vld [vmem:[#allocation4 + $0x20] sm:$0xff]  ;;  %v3489_v46 = vpack.c.bf16 %v416_v42, %v414_v41  ;;  %v3492_v47 = vpack.c.bf16 %v421_v44, %v419_v43  ;;  %v418_v48 = vld [vmem:[#allocation10 + $0xa0] sm:$0xff]  ;;  %v420_v49 = vld [vmem:[#allocation10 + $0xb0] sm:$0xff] }
  0x67   :  { %2622 = vmatpush1.bf16.msra.mxu0 %v3465_v22  ;;  %228 = vmatprep.mubr.f32.mxu0 %v3341_v0  ;;  %v423_v51 = vld [vmem:[#allocation10 + $0xc8] sm:$0xff]  ;;  %v425_v52 = vld [vmem:[#allocation10 + $0xd8] sm:$0xff]  ;;  %v101_v53 = vld [vmem:[#allocation4 + $0x28] sm:$0xff]  ;;  %v3500_v54 = vpack.c.bf16 %v420_v49, %v418_v48 }
  0x68   :  { %2624 = vmatprep.subr.bf16.mxu0 %v3468_v23  ;;  %2612 = vmatprep.subr.bf16.mxu1 %v2611_v39  ;;  %v3503_v55 = vpack.c.bf16 %v425_v52, %v423_v51  ;;  %v422_v56 = vld [vmem:[#allocation10 + $0xc0] sm:$0xff]  ;;  %v424_v57 = vld [vmem:[#allocation10 + $0xd0] sm:$0xff]  ;;  %v427_v58 = vld [vmem:[#allocation10 + $0xe8] sm:$0xff] }
  0x69   :  { %2614 = vmatpush3.bf16.msra.mxu1 %v2611_v39  ;;  %v429_v59 = vld [vmem:[#allocation10 + $0xf8] sm:$0xff]  ;;  %v3510_v61 = vpack.c.bf16 %v424_v57, %v422_v56  ;;  %v426_v63 = vld [vmem:[#allocation10 + $0xe0] sm:$0xff]  ;;  %v428_v1 = vld [vmem:[#allocation10 + $0xf0] sm:$0xff] }
  0x6a   :  { %2135 = vmatmul.mubr.msk.f32.gmra.mrb[4].mxu0 %vm127_vm0, %v98_v28  ;;  %2647 = vmatprep.subr.bf16.mxu1 %v3342_v50  ;;  %v102_v60 = vld [vmem:[#allocation4 + $0x30] sm:$0xff]  ;;  %v3513_v62 = vpack.c.bf16 %v429_v59, %v427_v58  ;;  %v103_v2 = vld [vmem:[#allocation4 + $0x38] sm:$0xff]  ;;  %v3520_v3 = vpack.c.bf16 %v428_v1, %v426_v63  ;;  %v3527_v4 = vld [vmem:[#allocation7] sm:$0xff] }
  0x6b   :  { %2626 = vmatpush1.bf16.msra.mxu0 %v3473_v29  ;;  %234 = vmatprep.mubr.f32.mxu0 %v3341_v0  ;;  %v516_v5 = vld [vmem:[#allocation12] sm:$0xff]  ;;  %v517_v6 = vld [vmem:[#allocation12 + $0x8] sm:$0xff]  ;;  %v518_v8 = vld [vmem:[#allocation12 + $0x10] sm:$0xff] }
  0x6c   :  { %2628 = vmatprep.subr.bf16.mxu0 %v3476_v30  ;;  %2316 = vmatmul.mubr.msk.f32.vlgmr.msra.gmra.mrb[0].mxu1 %vm127_vm0, %v97_v21  ;;  %v3548_v7 = vpack.c.bf16 %v517_v6, %v516_v5  ;;  %v519_v9 = vld [vmem:[#allocation12 + $0x18] sm:$0xff]  ;;  %v520_v11 = vld [vmem:[#allocation12 + $0x20] sm:$0xff]  ;;  %v521_v13 = vld [vmem:[#allocation12 + $0x28] sm:$0xff] }
  0x6d   :  { %2318 = vmatprep.mubr.msk.f32.mxu1 %vm127_vm0, %v98_v28  ;;  %v3552_v10 = vpack.c.bf16 %v519_v9, %v518_v8  ;;  %v3556_v14 = vpack.c.bf16 %v521_v13, %v520_v11  ;;  %v522_v17 = vld [vmem:[#allocation12 + $0x30] sm:$0xff]  ;;  %v523_v18 = vld [vmem:[#allocation12 + $0x38] sm:$0xff]  ;;  %v524_v20 = vld [vmem:[#allocation12 + $0x40] sm:$0xff] }
  0x6e   :  { %2136 = vmatmul.mubr.msk.f32.gmra.mrb[6].mxu0 %vm127_vm0, %v99_v37  ;;  %2649 = vmatpush3.bf16.msra.mxu1 %v3548_v7  ;;  %v3560_v19 = vpack.c.bf16 %v523_v18, %v522_v17  ;;  %v525_v21 = vld [vmem:[#allocation12 + $0x48] sm:$0xff]  ;;  %v526_v25 = vld [vmem:[#allocation12 + $0x50] sm:$0xff]  ;;  %v527_v26 = vld [vmem:[#allocation12 + $0x58] sm:$0xff] }
  0x6f   :  { %2630 = vmatpush1.bf16.msra.mxu0 %v3481_v38  ;;  %240 = vmatprep.mubr.f32.mxu0 %v3341_v0  ;;  %v3564_v24 = vpack.c.bf16 %v525_v21, %v524_v20  ;;  %v3568_v27 = vpack.c.bf16 %v527_v26, %v526_v25  ;;  %v528_v28 = vld [vmem:[#allocation12 + $0x60] sm:$0xff]  ;;  %v529_v31 = vld [vmem:[#allocation12 + $0x68] sm:$0xff]  ;;  %v530_v33 = vld [vmem:[#allocation12 + $0x70] sm:$0xff] }
  0x70   :  { %2632 = vmatprep.subr.bf16.mxu0 %v3484_v40  ;;  %2319 = vmatmul.mubr.msk.f32.gmra.mrb[2].mxu1 %vm127_vm0, %v99_v37  ;;  %v3571_v32 = vpack.c.bf16 %v529_v31, %v528_v28  ;;  %v531_v34 = vld [vmem:[#allocation12 + $0x78] sm:$0xff]  ;;  %v113_v37 = vshrl.u32 %v112_v36, 7  ;;  %v110_v41 = vld [vmem:[%s3934_s5] sm:$0x7]  ;;  %s3344_s5 = smov [#allocation13]  }
  0x71   :  { %2321 = vmatprep.mubr.msk.f32.mxu1 %vm127_vm0, %v100_v45  ;;  %2650 = vmatprep.subr.bf16.mxu1 %v3342_v50  ;;  %v3577_v35 = vpack.c.bf16 %v531_v34, %v530_v33  ;;  %s2119_s12 = sshll.u32 %s3344_s5, 4  ;;  %s2120_s12 = int_to_ptr.vmem [resolvable:$true] %s2119_s12 }
  0x72   :  { %2137 = vmatmul.mubr.msk.f32.gmra.mrb[8].mxu0 %vm127_vm0, %v100_v45  ;;  %2652 = vmatpush3.bf16.msra.mxu1 %v3552_v10  ;;  %v122_v39 = vsub.s32 2, %v113_v37  ;;  %v114_v58 = vsub.s32 0, %v113_v37  ;;  %v118_v21 = vsub.s32 1, %v113_v37  ;;  %s3300_s13 = scalar_lea.vmem %s2120_s12, 1024  ;;  %p3305_p13 = scmp.lt.s32.totalorder %s2120_s12, %s2120_s12 }
  0x73   :  { %2634 = vmatpush1.bf16.msra.mxu0 %v3489_v46  ;;  %246 = vmatprep.mubr.f32.mxu0 %v3341_v0  ;;  %p3301_p12 = scmp.ne.s32.totalorder %s2120_s12, %s3300_s13  ;;  %p3306_p0 = scmp.lt.s32.totalorder %s3300_s13, %s3300_s13 }
  0x74   :  { %2636 = vmatprep.subr.bf16.mxu0 %v3492_v47  ;;  %2322 = vmatmul.mubr.msk.f32.gmra.mrb[4].mxu1 %vm127_vm0, %v101_v53  ;;  %v123_v42 = vrot.slane %v110_v41, %v122_v39  ;;  %v3621_v25 = vrot.slane %v110_v41, %v118_v21 }
  0x75   :  { %2324 = vmatprep.mubr.msk.f32.mxu1 %vm127_vm0, %v102_v60  ;;  %2653 = vmatprep.subr.bf16.mxu1 %v3342_v50  ;;  %p3307_p1 = por %p3306_p0, %p3305_p13 }
  0x76   :  { %2138 = vmatmul.mubr.msk.f32.gmra.mrb[10].mxu0 %vm127_vm0, %v101_v53  ;;  %2655 = vmatpush3.bf16.msra.mxu1 %v3556_v14 }
  0x77   :  { %2638 = vmatpush1.bf16.msra.mxu0 %v3500_v54  ;;  %252 = vmatprep.mubr.f32.mxu0 %v3341_v0  ;;  %p3308_p2 = pnand %p3307_p1, %p3301_p12 }
  0x78   :  { %2640 = vmatprep.subr.bf16.mxu0 %v3503_v55  ;;  %2325 = vmatmul.mubr.msk.f32.gmra.mrb[6].mxu1 %vm127_vm0, %v103_v2 }
  0x79   :  { %2656 = vmatprep.subr.bf16.mxu1 %v3342_v50  ;;  %2359 = vmatprep.mubr.msk.f32.mxu1 %vm3343_vm1, %v3341_v0 }
  0x7a   :  { %2139 = vmatmul.mubr.msk.f32.gmra.mrb[12].mxu0 %vm127_vm0, %v102_v60  ;;  %2658 = vmatpush3.bf16.msra.mxu1 %v3560_v19 }
  0x7b   :  { %2642 = vmatpush1.bf16.msra.mxu0 %v3510_v61  ;;  %258 = vmatprep.mubr.f32.mxu0 %v3341_v0 }
  0x7c   :  { %2644 = vmatprep.subr.bf16.mxu0 %v3513_v62  ;;  %2659 = vmatprep.subr.bf16.mxu1 %v3342_v50 }
  0x7e   :  { %2140 = vmatmul.mubr.msk.f32.gmra.mrb[14].mxu0 %vm127_vm0, %v103_v2  ;;  %2661 = vmatpush3.bf16.msra.mxu1 %v3564_v24  ;;  %v3597_v2 = vrot.slane %v110_v41, %v114_v58 }
  0x7f   :  { %2646 = vmatpush1.bf16.msra.mxu0 %v3520_v3  ;;  %494 = vmatprep.mubr.f32.mxu0 %v3341_v0 }
  0x80   :  { %2672 = vmatprep.subr.bf16.mxu0 %v3455_v12  ;;  %2662 = vmatprep.subr.bf16.mxu1 %v3342_v50 }
  0x82   :  { %495 = vmatmul.mubr.f32.vlgmr.msra.gmra.mrb[0].mxu0 %v3527_v4  ;;  %2664 = vmatpush3.bf16.msra.mxu1 %v3568_v27 }
  0x83   :  { %2674 = vmatpush1.bf16.msra.mxu0 %v3457_v15  ;;  %708 = vmatprep.mubr.f32.mxu0 %v3341_v0 }
  0x84   :  { %2676 = vmatprep.subr.bf16.mxu0 %v3460_v16  ;;  %2665 = vmatprep.subr.bf16.mxu1 %v3342_v50 }
  0x86   :  { %2667 = vmatpush3.bf16.msra.mxu1 %v3571_v32 }
  0x87   :  { %2678 = vmatpush1.bf16.msra.mxu0 %v3465_v22  ;;  %2668 = vmatprep.subr.bf16.mxu1 %v3342_v50 }
  0x88   :  { %2680 = vmatprep.subr.bf16.mxu0 %v3468_v23 }
  0x8a   :  { %2670 = vmatpush3.bf16.msra.mxu1 %v3577_v35 }
  0x8b   :  { %2682 = vmatpush1.bf16.msra.mxu0 %v3473_v29  ;;  %2703 = vmatprep.subr.bf16.mxu1 %v3342_v50 }
  0x8c   :  { %2684 = vmatprep.subr.bf16.mxu0 %v3476_v30 }
  0x8f   :  { %2686 = vmatpush1.bf16.msra.mxu0 %v3481_v38 }
  0x90   :  { %2688 = vmatprep.subr.bf16.mxu0 %v3484_v40 }
  0x93   :  { %2690 = vmatpush1.bf16.msra.mxu0 %v3489_v46 }
  0x94   :  { %2692 = vmatprep.subr.bf16.mxu0 %v3492_v47 }
  0x97   :  { %2694 = vmatpush1.bf16.msra.mxu0 %v3500_v54 }
  0x98   :  { %2696 = vmatprep.subr.bf16.mxu0 %v3503_v55 }
  0x9b   :  { %2698 = vmatpush1.bf16.msra.mxu0 %v3510_v61 }
  0x9c   :  { %2700 = vmatprep.subr.bf16.mxu0 %v3513_v62 }
  0x9f   :  { %2702 = vmatpush1.bf16.msra.mxu0 %v3520_v3 }
  0xa0   :  { %2728 = vmatprep.subr.bf16.mxu0 %v3455_v12 }
 0x13f   :  { %v2317_v43 = vpop.f32.mrb[0].mxu1 }
 0x140   :  { %v3585_v44 = vadd.f32 %v2317_v43, %v123_v42  ;;  %v331_v45 = vpop.f32.mrb[1].mxu1 }
 0x141   :  { %v332_v33 = vadd.f32 %v331_v45, %v123_v42 }
 0x143   :  { %v2320_v48 = vpop.f32.mrb[2].mxu1 }
 0x144   :  { %v3587_v49 = vadd.f32 %v2320_v48, %v123_v42  ;;  %v341_v51 = vpop.f32.mrb[3].mxu1 }
 0x145   :  { %v3589_v52 = vadd.f32 %v341_v51, %v123_v42 }
 0x147   :  { %v2323_v53 = vpop.f32.mrb[4].mxu1 }
 0x148   :  { %v3591_v56 = vadd.f32 %v2323_v53, %v123_v42  ;;  %v351_v57 = vpop.f32.mrb[5].mxu1 }
 0x149   :  { %v3593_v59 = vadd.f32 %v351_v57, %v123_v42 }
 0x14b   :  { %v2326_v60 = vpop.f32.mrb[6].mxu1 }
 0x14c   :  { %v3595_v63 = vadd.f32 %v2326_v60, %v123_v42  ;;  %v361_v1 = vpop.f32.mrb[7].mxu1 }
 0x14d   :  { %v3599_v5 = vadd.f32 %v361_v1, %v123_v42 }
 0x155   :  { %v496_v6 = vpop.f32.mrb[0].mxu0 }
 0x156   :  { %v3063_v8 = vadd.f32 %v496_v6, %v3597_v2  ;;  %v498_v9 = vpop.f32.mrb[1].mxu0 }
 0x157   :  { %v3064_v26 = vadd.f32 %v498_v9, %v3621_v25 }
 0x158   :  { %v2149_v11 = vmul.f32 -1.442695, %v3063_v8 }
 0x159   :  { %v2150_v28 = vmul.f32 -1.442695, %v3064_v26 }
 0x15a   :  { %3110 = vpow2.f32 %v2149_v11 }
 0x164   :  { %v3111_v13 = vpop.eup %3110 }
 0x165   :  { %v505_v17 = vadd.f32 1.0, %v3111_v13 }
 0x167   :  { %3112 = vrcp.f32 %v505_v17 }
 0x168   :  { %3114 = vpow2.f32 %v2150_v28 }
 0x171   :  { %v3113_v18 = vpop.eup %3112 }
 0x172   :  { %v515_v20 = vmul.f32 %v3113_v18, %v3527_v4  ;;  %v3115_v31 = vpop.eup %3114 }
 0x173   :  { %v512_v36 = vadd.f32 1.0, %v3115_v31 }
 0x174   :  { %2360 = vmatmul.mubr.f32.vlgmr.msra.gmra.mrb[8].mxu1 %v515_v20 }
 0x175   :  { %2705 = vmatpush3.bf16.msra.mxu1 %v3548_v7  ;;  %2394 = vmatprep.mubr.msk.f32.mxu1 %vm3343_vm1, %v3341_v0 }
 0x176   :  { %2706 = vmatprep.subr.bf16.mxu1 %v3342_v50 }
 0x179   :  { %2708 = vmatpush3.bf16.msra.mxu1 %v3552_v10 }
 0x17a   :  { %2709 = vmatprep.subr.bf16.mxu1 %v3342_v50 }
 0x17d   :  { %2711 = vmatpush3.bf16.msra.mxu1 %v3556_v14 }
 0x17e   :  { %2712 = vmatprep.subr.bf16.mxu1 %v3342_v50 }
 0x181   :  { %2714 = vmatpush3.bf16.msra.mxu1 %v3560_v19 }
 0x182   :  { %2715 = vmatprep.subr.bf16.mxu1 %v3342_v50 }
 0x185   :  { %2717 = vmatpush3.bf16.msra.mxu1 %v3564_v24 }
 0x186   :  { %2718 = vmatprep.subr.bf16.mxu1 %v3342_v50 }
 0x189   :  { %2720 = vmatpush3.bf16.msra.mxu1 %v3568_v27 }
 0x18a   :  { %2721 = vmatprep.subr.bf16.mxu1 %v3342_v50 }
 0x18d   :  { %2723 = vmatpush3.bf16.msra.mxu1 %v3571_v32 }
 0x18e   :  { %2724 = vmatprep.subr.bf16.mxu1 %v3342_v50 }
 0x191   :  { %2726 = vmatpush3.bf16.msra.mxu1 %v3577_v35 }
 0x192   :  { %2759 = vmatprep.subr.bf16.mxu1 %v3342_v50 }
 0x247   :  { %v598_v34 = vpop.f32.mrb[8].mxu1 }
 0x248   :  { %v602_v39 = vadd.f32 %v598_v34, %v332_v33  ;;  %v2361_v43 = vpop.f32.mrb[9].mxu1  ;;  %v1262_v33 = vld [vmem:[#allocation10 + $0x28] sm:$0xff]  ;;  %v1264_v34 = vld [vmem:[#allocation10 + $0x38] sm:$0xff] }
 0x249   :  { %v1261_v43 = vld [vmem:[#allocation10 + $0x20] sm:$0xff] }
 0x24a   :  { %3116 = vtanh.f32 %v602_v39  ;;  %v3709_v39 = vpack.c.bf16 %v1264_v34, %v1262_v33 }
 0x24b   :  { %3118 = vrcp.f32 %v512_v36 }
 0x254   :  { %v3117_v48 = vpop.eup %3116 }
 0x255   :  { %v604_v51 = vsub.f32 %v3527_v4, %v3117_v48  ;;  %v3119_v53 = vpop.eup %3118 }
 0x257   :  { %v605_v57 = vmul.f32 %v3119_v53, %v604_v51  ;;  %v1266_v51 = vld [vmem:[#allocation10 + $0x48] sm:$0xff]  ;;  %v1268_v53 = vld [vmem:[#allocation10 + $0x58] sm:$0xff] }
 0x259   :  { %v606_v37 = vadd.f32 %v3117_v48, %v605_v57  ;;  %v1263_v48 = vld [vmem:[#allocation10 + $0x30] sm:$0xff] }
 0x25a   :  { %v3713_v57 = vpack.c.bf16 %v1263_v48, %v1261_v43 }
 0x25b   :  { %607 = vst [vmem:[#allocation13] sm:$0xff] %v606_v37  ;;  %709 = vmatmul.mubr.f32.vlgmr.msra.gmra.mrb[2].mxu0 %v606_v37 }
 0x25c   :  { %2730 = vmatpush1.bf16.msra.mxu0 %v3457_v15  ;;  %923 = vmatprep.mubr.f32.mxu0 %v3341_v0 }
 0x25d   :  { %2732 = vmatprep.subr.bf16.mxu0 %v3460_v16 }
 0x260   :  { %2734 = vmatpush1.bf16.msra.mxu0 %v3465_v22 }
 0x261   :  { %2736 = vmatprep.subr.bf16.mxu0 %v3468_v23 }
 0x264   :  { %2738 = vmatpush1.bf16.msra.mxu0 %v3473_v29 }
 0x265   :  { %2740 = vmatprep.subr.bf16.mxu0 %v3476_v30 }
 0x268   :  { %2742 = vmatpush1.bf16.msra.mxu0 %v3481_v38 }
 0x269   :  { %2744 = vmatprep.subr.bf16.mxu0 %v3484_v40 }
 0x26c   :  { %2746 = vmatpush1.bf16.msra.mxu0 %v3489_v46 }
 0x26d   :  { %2748 = vmatprep.subr.bf16.mxu0 %v3492_v47 }
 0x270   :  { %2750 = vmatpush1.bf16.msra.mxu0 %v3500_v54 }
 0x271   :  { %2752 = vmatprep.subr.bf16.mxu0 %v3503_v55 }
 0x274   :  { %2754 = vmatpush1.bf16.msra.mxu0 %v3510_v61 }
 0x275   :  { %2756 = vmatprep.subr.bf16.mxu0 %v3513_v62 }
 0x278   :  { %2758 = vmatpush1.bf16.msra.mxu0 %v3520_v3 }
 0x279   :  { %2784 = vmatprep.subr.bf16.mxu0 %v3455_v12 }
 0x32e   :  { %v710_v4 = vpop.f32.mrb[2].mxu0 }
 0x32f   :  { %v3065_v41 = vadd.f32 %v710_v4, %v3597_v2  ;;  %v712_v42 = vpop.f32.mrb[3].mxu0  ;;  %v1265_v4 = vld [vmem:[#allocation10 + $0x40] sm:$0xff] }
 0x330   :  { %v3066_v12 = vadd.f32 %v712_v42, %v3621_v25 }
 0x331   :  { %v2151_v45 = vmul.f32 -1.442695, %v3065_v41  ;;  %v1267_v41 = vld [vmem:[#allocation10 + $0x50] sm:$0xff] }
 0x332   :  { %v2152_v8 = vmul.f32 -1.442695, %v3066_v12  ;;  %v3719_v42 = vpack.c.bf16 %v1267_v41, %v1265_v4 }
 0x333   :  { %3120 = vpow2.f32 %v2151_v45 }
 0x33d   :  { %v3121_v58 = vpop.eup %3120 }
 0x33e   :  { %v719_v60 = vadd.f32 1.0, %v3121_v58 }
 0x340   :  { %3122 = vrcp.f32 %v719_v60 }
 0x341   :  { %3124 = vpow2.f32 %v2152_v8 }
 0x34a   :  { %v3123_v1 = vpop.eup %3122 }
 0x34b   :  { %v729_v6 = vmul.f32 %v3123_v1, %v606_v37  ;;  %v3125_v9 = vpop.eup %3124 }
 0x34c   :  { %v726_v13 = vadd.f32 1.0, %v3125_v9 }
 0x34d   :  { %2395 = vmatmul.mubr.f32.vlgmr.msra.gmra.mrb[10].mxu1 %v729_v6 }
 0x34e   :  { %2761 = vmatpush3.bf16.msra.mxu1 %v3548_v7  ;;  %2429 = vmatprep.mubr.msk.f32.mxu1 %vm3343_vm1, %v3341_v0 }
 0x34f   :  { %2762 = vmatprep.subr.bf16.mxu1 %v3342_v50 }
 0x352   :  { %2764 = vmatpush3.bf16.msra.mxu1 %v3552_v10 }
 0x353   :  { %2765 = vmatprep.subr.bf16.mxu1 %v3342_v50 }
 0x356   :  { %2767 = vmatpush3.bf16.msra.mxu1 %v3556_v14 }
 0x357   :  { %2768 = vmatprep.subr.bf16.mxu1 %v3342_v50 }
 0x35a   :  { %2770 = vmatpush3.bf16.msra.mxu1 %v3560_v19 }
 0x35b   :  { %2771 = vmatprep.subr.bf16.mxu1 %v3342_v50 }
 0x35e   :  { %2773 = vmatpush3.bf16.msra.mxu1 %v3564_v24 }
 0x35f   :  { %2774 = vmatprep.subr.bf16.mxu1 %v3342_v50 }
 0x362   :  { %2776 = vmatpush3.bf16.msra.mxu1 %v3568_v27 }
 0x363   :  { %2777 = vmatprep.subr.bf16.mxu1 %v3342_v50 }
 0x366   :  { %2779 = vmatpush3.bf16.msra.mxu1 %v3571_v32 }
 0x367   :  { %2780 = vmatprep.subr.bf16.mxu1 %v3342_v50 }
 0x36a   :  { %2782 = vmatpush3.bf16.msra.mxu1 %v3577_v35 }
 0x36b   :  { %2815 = vmatprep.subr.bf16.mxu1 %v3342_v50 }
 0x420   :  { %v812_v11 = vpop.f32.mrb[10].mxu1 }
 0x421   :  { %v816_v17 = vadd.f32 %v812_v11, %v3585_v44  ;;  %v2396_v18 = vpop.f32.mrb[11].mxu1  ;;  %v1270_v11 = vld [vmem:[#allocation10 + $0x68] sm:$0xff] }
 0x422   :  { %v1269_v18 = vld [vmem:[#allocation10 + $0x60] sm:$0xff] }
 0x423   :  { %3126 = vtanh.f32 %v816_v17 }
 0x424   :  { %3128 = vrcp.f32 %v726_v13  ;;  %v1272_v13 = vld [vmem:[#allocation10 + $0x78] sm:$0xff] }
 0x425   :  { %v3727_v17 = vpack.c.bf16 %v1272_v13, %v1270_v11  ;;  %v1381_v13 = vld [vmem:[#allocation12 + $0x30] sm:$0xff] }
 0x42d   :  { %v3127_v20 = vpop.eup %3126 }
 0x42e   :  { %v818_v21 = vsub.f32 %v606_v37, %v3127_v20  ;;  %v3129_v26 = vpop.eup %3128  ;;  %v3716_v37 = vpack.c.bf16 %v1268_v53, %v1266_v51 }
 0x430   :  { %v819_v28 = vmul.f32 %v3129_v26, %v818_v21  ;;  %v1274_v26 = vld [vmem:[#allocation10 + $0x88] sm:$0xff] }
 0x432   :  { %v820_v31 = vadd.f32 %v3127_v20, %v819_v28  ;;  %v1271_v20 = vld [vmem:[#allocation10 + $0x70] sm:$0xff]  ;;  %v1276_v28 = vld [vmem:[#allocation10 + $0x98] sm:$0xff] }
 0x433   :  { %v3729_v21 = vpack.c.bf16 %v1271_v20, %v1269_v18  ;;  %v1382_v18 = vld [vmem:[#allocation12 + $0x38] sm:$0xff] }
 0x434   :  { %822 = vst [vmem:[#allocation13 + $0x8] sm:$0xff] %v820_v31  ;;  %924 = vmatmul.mubr.f32.vlgmr.msra.gmra.mrb[4].mxu0 %v820_v31  ;;  %v3794_v20 = vpack.c.bf16 %v1382_v18, %v1381_v13 }
 0x435   :  { %2786 = vmatpush1.bf16.msra.mxu0 %v3457_v15  ;;  %1138 = vmatprep.mubr.f32.mxu0 %v3341_v0 }
 0x436   :  { %2788 = vmatprep.subr.bf16.mxu0 %v3460_v16 }
 0x439   :  { %2790 = vmatpush1.bf16.msra.mxu0 %v3465_v22 }
 0x43a   :  { %2792 = vmatprep.subr.bf16.mxu0 %v3468_v23 }
 0x43d   :  { %2794 = vmatpush1.bf16.msra.mxu0 %v3473_v29 }
 0x43e   :  { %2796 = vmatprep.subr.bf16.mxu0 %v3476_v30 }
 0x441   :  { %2798 = vmatpush1.bf16.msra.mxu0 %v3481_v38 }
 0x442   :  { %2800 = vmatprep.subr.bf16.mxu0 %v3484_v40 }
 0x445   :  { %2802 = vmatpush1.bf16.msra.mxu0 %v3489_v46 }
 0x446   :  { %2804 = vmatprep.subr.bf16.mxu0 %v3492_v47 }
 0x449   :  { %2806 = vmatpush1.bf16.msra.mxu0 %v3500_v54 }
 0x44a   :  { %2808 = vmatprep.subr.bf16.mxu0 %v3503_v55 }
 0x44d   :  { %2810 = vmatpush1.bf16.msra.mxu0 %v3510_v61 }
 0x44e   :  { %2812 = vmatprep.subr.bf16.mxu0 %v3513_v62 }
 0x451   :  { %2814 = vmatpush1.bf16.msra.mxu0 %v3520_v3 }
 0x507   :  { %v925_v15 = vpop.f32.mrb[4].mxu0 }
 0x508   :  { %v3067_v16 = vadd.f32 %v925_v15, %v3597_v2  ;;  %v927_v22 = vpop.f32.mrb[5].mxu0  ;;  %v1273_v15 = vld [vmem:[#allocation10 + $0x80] sm:$0xff] }
 0x509   :  { %v3068_v46 = vadd.f32 %v927_v22, %v3621_v25 }
 0x50a   :  { %v2153_v23 = vmul.f32 -1.442695, %v3067_v16  ;;  %v1275_v16 = vld [vmem:[#allocation10 + $0x90] sm:$0xff] }
 0x50b   :  { %v2154_v47 = vmul.f32 -1.442695, %v3068_v46  ;;  %v3735_v22 = vpack.c.bf16 %v1275_v16, %v1273_v15  ;;  %v1282_v46 = vld [vmem:[#allocation10 + $0xc8] sm:$0xff]  ;;  %v1385_v16 = vld [vmem:[#allocation12 + $0x50] sm:$0xff] }
 0x50c   :  { %3130 = vpow2.f32 %v2153_v23  ;;  %v1278_v23 = vld [vmem:[#allocation10 + $0xa8] sm:$0xff] }
 0x516   :  { %v3131_v29 = vpop.eup %3130 }
 0x517   :  { %v934_v30 = vadd.f32 1.0, %v3131_v29  ;;  %v1280_v29 = vld [vmem:[#allocation10 + $0xb8] sm:$0xff] }
 0x519   :  { %3132 = vrcp.f32 %v934_v30  ;;  %v1277_v30 = vld [vmem:[#allocation10 + $0xa0] sm:$0xff] }
 0x51a   :  { %3134 = vpow2.f32 %v2154_v47  ;;  %v1284_v47 = vld [vmem:[#allocation10 + $0xd8] sm:$0xff] }
 0x523   :  { %v3133_v38 = vpop.eup %3132 }
 0x524   :  { %v944_v40 = vmul.f32 %v3133_v38, %v820_v31  ;;  %v3135_v54 = vpop.eup %3134  ;;  %v3738_v38 = vpack.c.bf16 %v1280_v29, %v1278_v23  ;;  %v1386_v23 = vld [vmem:[#allocation12 + $0x58] sm:$0xff] }
 0x525   :  { %v941_v61 = vadd.f32 1.0, %v3135_v54  ;;  %v3802_v29 = vpack.c.bf16 %v1386_v23, %v1385_v16 }
 0x526   :  { %2430 = vmatmul.mubr.f32.vlgmr.msra.gmra.mrb[12].mxu1 %v944_v40  ;;  %v1279_v40 = vld [vmem:[#allocation10 + $0xb0] sm:$0xff] }
 0x527   :  { %2817 = vmatpush3.bf16.msra.mxu1 %v3548_v7  ;;  %2464 = vmatprep.mubr.msk.f32.mxu1 %vm3343_vm1, %v3341_v0  ;;  %v3741_v54 = vpack.c.bf16 %v1279_v40, %v1277_v30  ;;  %v1387_v30 = vld [vmem:[#allocation12 + $0x60] sm:$0xff]  ;;  %v1388_v40 = vld [vmem:[#allocation12 + $0x68] sm:$0xff] }
 0x528   :  { %2818 = vmatprep.subr.bf16.mxu1 %v3342_v50 }
 0x52b   :  { %2820 = vmatpush3.bf16.msra.mxu1 %v3552_v10 }
 0x52c   :  { %2821 = vmatprep.subr.bf16.mxu1 %v3342_v50 }
 0x52f   :  { %2823 = vmatpush3.bf16.msra.mxu1 %v3556_v14 }
 0x530   :  { %2824 = vmatprep.subr.bf16.mxu1 %v3342_v50 }
 0x533   :  { %2826 = vmatpush3.bf16.msra.mxu1 %v3560_v19 }
 0x534   :  { %2827 = vmatprep.subr.bf16.mxu1 %v3342_v50 }
 0x537   :  { %2829 = vmatpush3.bf16.msra.mxu1 %v3564_v24 }
 0x538   :  { %2830 = vmatprep.subr.bf16.mxu1 %v3342_v50 }
 0x53b   :  { %2832 = vmatpush3.bf16.msra.mxu1 %v3568_v27  ;;  %v1258_v27 = vld [vmem:[#allocation10 + $0x8] sm:$0xff] }
 0x53c   :  { %2833 = vmatprep.subr.bf16.mxu1 %v3342_v50 }
 0x53f   :  { %2835 = vmatpush3.bf16.msra.mxu1 %v3571_v32  ;;  %v1260_v32 = vld [vmem:[#allocation10 + $0x18] sm:$0xff] }
 0x540   :  { %2836 = vmatprep.subr.bf16.mxu1 %v3342_v50  ;;  %v3705_v44 = vpack.c.bf16 %v1260_v32, %v1258_v27  ;;  %v1287_v27 = vld [vmem:[#allocation10 + $0xf0] sm:$0xff] }
 0x542   :  { %2840 = vmatprep.subr.bf16.mxu0 %v3705_v44 }
 0x543   :  { %2838 = vmatpush3.bf16.msra.mxu1 %v3577_v35  ;;  %v1257_v35 = vld [vmem:[#allocation10] sm:$0xff] }
 0x544   :  { %2871 = vmatprep.subr.bf16.mxu1 %v3342_v50 }
 0x5f9   :  { %v1027_v55 = vpop.f32.mrb[12].mxu1 }
 0x5fa   :  { %v1031_v62 = vadd.f32 %v1027_v55, %v3589_v52  ;;  %v2431_v3 = vpop.f32.mrb[13].mxu1  ;;  %v1259_v52 = vld [vmem:[#allocation10 + $0x10] sm:$0xff]  ;;  %v3744_v55 = vpack.c.bf16 %v1284_v47, %v1282_v46  ;;  %v3805_v46 = vpack.c.bf16 %v1388_v40, %v1387_v30 }
 0x5fb   :  { %v3707_v36 = vpack.c.bf16 %v1259_v52, %v1257_v35  ;;  %v1286_v3 = vld [vmem:[#allocation10 + $0xe8] sm:$0xff]  ;;  %v1389_v47 = vld [vmem:[#allocation12 + $0x70] sm:$0xff] }
 0x5fc   :  { %3136 = vtanh.f32 %v1031_v62  ;;  %v1283_v62 = vld [vmem:[#allocation10 + $0xd0] sm:$0xff] }
 0x5fd   :  { %3138 = vrcp.f32 %v941_v61  ;;  %v1281_v61 = vld [vmem:[#allocation10 + $0xc0] sm:$0xff] }
 0x606   :  { %v3137_v7 = vpop.eup %3136 }
 0x607   :  { %v1033_v10 = vsub.f32 %v820_v31, %v3137_v7  ;;  %v3139_v14 = vpop.eup %3138  ;;  %v3733_v31 = vpack.c.bf16 %v1276_v28, %v1274_v26  ;;  %v1383_v26 = vld [vmem:[#allocation12 + $0x40] sm:$0xff]  ;;  %v1384_v28 = vld [vmem:[#allocation12 + $0x48] sm:$0xff] }
 0x608   :  { %v3798_v15 = vpack.c.bf16 %v1384_v28, %v1383_v26 }
 0x609   :  { %v1034_v19 = vmul.f32 %v3139_v14, %v1033_v10  ;;  %v3747_v10 = vpack.c.bf16 %v1283_v62, %v1281_v61  ;;  %v1390_v61 = vld [vmem:[#allocation12 + $0x78] sm:$0xff] }
 0x60a   :  { %v3809_v62 = vpack.c.bf16 %v1390_v61, %v1389_v47 }
 0x60b   :  { %v3700_v24 = vadd.f32 %v3137_v7, %v1034_v19  ;;  %v1288_v7 = vld [vmem:[#allocation10 + $0xf8] sm:$0xff]  ;;  %v1285_v19 = vld [vmem:[#allocation10 + $0xe0] sm:$0xff] }
 0x60c   :  { %v3750_v14 = vpack.c.bf16 %v1288_v7, %v1286_v3  ;;  %v3753_v32 = vpack.c.bf16 %v1287_v27, %v1285_v19 }
 0x60d   :  { %1037 = vst [vmem:[#allocation13 + $0x10] sm:$0xff] %v3700_v24  ;;  %1139 = vmatmul.mubr.f32.vlgmr.msra.gmra.mrb[6].mxu0 %v3700_v24 }
 0x60e   :  { %1353 = vmatprep.mubr.f32.mxu0 %v3341_v0  ;;  %2842 = vmatpush1.bf16.msra.mxu0 %v3707_v36 }
 0x60f   :  { %2844 = vmatprep.subr.bf16.mxu0 %v3709_v39 }
 0x612   :  { %2846 = vmatpush1.bf16.msra.mxu0 %v3713_v57 }
 0x613   :  { %2848 = vmatprep.subr.bf16.mxu0 %v3716_v37 }
 0x616   :  { %2850 = vmatpush1.bf16.msra.mxu0 %v3719_v42 }
 0x617   :  { %2852 = vmatprep.subr.bf16.mxu0 %v3727_v17 }
 0x61a   :  { %2854 = vmatpush1.bf16.msra.mxu0 %v3729_v21 }
 0x61b   :  { %2856 = vmatprep.subr.bf16.mxu0 %v3733_v31 }
 0x61e   :  { %2858 = vmatpush1.bf16.msra.mxu0 %v3735_v22 }
 0x61f   :  { %2860 = vmatprep.subr.bf16.mxu0 %v3738_v38 }
 0x622   :  { %2862 = vmatpush1.bf16.msra.mxu0 %v3741_v54 }
 0x623   :  { %2864 = vmatprep.subr.bf16.mxu0 %v3744_v55 }
 0x626   :  { %2866 = vmatpush1.bf16.msra.mxu0 %v3747_v10 }
 0x627   :  { %2868 = vmatprep.subr.bf16.mxu0 %v3750_v14 }
 0x62a   :  { %2870 = vmatpush1.bf16.msra.mxu0 %v3753_v32 }
 0x62b   :  { %2896 = vmatprep.subr.bf16.mxu0 %v3705_v44 }
 0x6e0   :  { %v1140_v45 = vpop.f32.mrb[6].mxu0 }
 0x6e1   :  { %v3069_v58 = vadd.f32 %v1140_v45, %v3597_v2  ;;  %v1142_v60 = vpop.f32.mrb[7].mxu0 }
 0x6e2   :  { %v3070_v35 = vadd.f32 %v1142_v60, %v3621_v25 }
 0x6e3   :  { %v2155_v1 = vmul.f32 -1.442695, %v3069_v58 }
 0x6e4   :  { %v2156_v52 = vmul.f32 -1.442695, %v3070_v35 }
 0x6e5   :  { %3140 = vpow2.f32 %v2155_v1  ;;  %v1377_v1 = vld [vmem:[#allocation12 + $0x10] sm:$0xff] }
 0x6ef   :  { %v3141_v6 = vpop.eup %3140 }
 0x6f0   :  { %v1149_v12 = vadd.f32 1.0, %v3141_v6  ;;  %v1378_v6 = vld [vmem:[#allocation12 + $0x18] sm:$0xff] }
 0x6f2   :  { %3142 = vrcp.f32 %v1149_v12  ;;  %v3786_v12 = vpack.c.bf16 %v1378_v6, %v1377_v1 }
 0x6f3   :  { %3144 = vpow2.f32 %v2156_v52 }
 0x6fc   :  { %v3143_v8 = vpop.eup %3142 }
 0x6fd   :  { %v1159_v9 = vmul.f32 %v3143_v8, %v3700_v24  ;;  %v3145_v33 = vpop.eup %3144  ;;  %v1379_v8 = vld [vmem:[#allocation12 + $0x20] sm:$0xff] }
 0x6fe   :  { %v1156_v43 = vadd.f32 1.0, %v3145_v33 }
 0x6ff   :  { %2465 = vmatmul.mubr.f32.vlgmr.msra.gmra.mrb[14].mxu1 %v1159_v9  ;;  %v1380_v9 = vld [vmem:[#allocation12 + $0x28] sm:$0xff] }
 0x700   :  { %2499 = vmatprep.mubr.msk.f32.mxu1 %vm3343_vm1, %v3341_v0  ;;  %v3790_v11 = vpack.c.bf16 %v1380_v9, %v1379_v8 }
 0x7d2   :  { %v1242_v34 = vpop.f32.mrb[14].mxu1 }
 0x7d3   :  { %v1246_v48 = vadd.f32 %v1242_v34, %v3587_v49  ;;  %v2466_v51 = vpop.f32.mrb[15].mxu1  ;;  %v1375_v49 = vld [vmem:[#allocation12] sm:$0xff] }
 0x7d5   :  { %3146 = vtanh.f32 %v1246_v48 }
 0x7d6   :  { %3148 = vrcp.f32 %v1156_v43 }
 0x7df   :  { %v3147_v53 = vpop.eup %3146 }
 0x7e0   :  { %v1248_v4 = vsub.f32 %v3700_v24, %v3147_v53  ;;  %v3149_v41 = vpop.eup %3148  ;;  %v1376_v24 = vld [vmem:[#allocation12 + $0x8] sm:$0xff] }
 0x7e1   :  { %v3782_v60 = vpack.c.bf16 %v1376_v24, %v1375_v49 }
 0x7e2   :  { %v1249_v45 = vmul.f32 %v3149_v41, %v1248_v4 }
 0x7e3   :  { %2873 = vmatpush3.bf16.msra.mxu1 %v3782_v60 }
 0x7e4   :  { %v3761_v58 = vadd.f32 %v3147_v53, %v1249_v45  ;;  %2874 = vmatprep.subr.bf16.mxu1 %v3342_v50 }
 0x7e6   :  { %1252 = vst [vmem:[#allocation13 + $0x18] sm:$0xff] %v3761_v58  ;;  %1354 = vmatmul.mubr.f32.vlgmr.msra.gmra.mrb[8].mxu0 %v3761_v58 }
 0x7e7   :  { %2898 = vmatpush1.bf16.msra.mxu0 %v3707_v36  ;;  %1568 = vmatprep.mubr.f32.mxu0 %v3341_v0 }
 0x7e8   :  { %2900 = vmatprep.subr.bf16.mxu0 %v3709_v39  ;;  %2876 = vmatpush3.bf16.msra.mxu1 %v3786_v12 }
 0x7e9   :  { %2877 = vmatprep.subr.bf16.mxu1 %v3342_v50 }
 0x7eb   :  { %2902 = vmatpush1.bf16.msra.mxu0 %v3713_v57 }
 0x7ec   :  { %2904 = vmatprep.subr.bf16.mxu0 %v3716_v37  ;;  %2879 = vmatpush3.bf16.msra.mxu1 %v3790_v11 }
 0x7ed   :  { %2880 = vmatprep.subr.bf16.mxu1 %v3342_v50 }
 0x7ef   :  { %2906 = vmatpush1.bf16.msra.mxu0 %v3719_v42 }
 0x7f0   :  { %2908 = vmatprep.subr.bf16.mxu0 %v3727_v17  ;;  %2882 = vmatpush3.bf16.msra.mxu1 %v3794_v20 }
 0x7f1   :  { %2883 = vmatprep.subr.bf16.mxu1 %v3342_v50 }
 0x7f3   :  { %2910 = vmatpush1.bf16.msra.mxu0 %v3729_v21 }
 0x7f4   :  { %2912 = vmatprep.subr.bf16.mxu0 %v3733_v31  ;;  %2885 = vmatpush3.bf16.msra.mxu1 %v3798_v15 }
 0x7f5   :  { %2886 = vmatprep.subr.bf16.mxu1 %v3342_v50 }
 0x7f7   :  { %2914 = vmatpush1.bf16.msra.mxu0 %v3735_v22 }
 0x7f8   :  { %2916 = vmatprep.subr.bf16.mxu0 %v3738_v38  ;;  %2888 = vmatpush3.bf16.msra.mxu1 %v3802_v29 }
 0x7f9   :  { %2889 = vmatprep.subr.bf16.mxu1 %v3342_v50 }
 0x7fb   :  { %2918 = vmatpush1.bf16.msra.mxu0 %v3741_v54 }
 0x7fc   :  { %2920 = vmatprep.subr.bf16.mxu0 %v3744_v55  ;;  %2891 = vmatpush3.bf16.msra.mxu1 %v3805_v46 }
 0x7fd   :  { %2892 = vmatprep.subr.bf16.mxu1 %v3342_v50 }
 0x7ff   :  { %2922 = vmatpush1.bf16.msra.mxu0 %v3747_v10 }
 0x800   :  { %2924 = vmatprep.subr.bf16.mxu0 %v3750_v14  ;;  %2894 = vmatpush3.bf16.msra.mxu1 %v3809_v62 }
 0x801   :  { %2927 = vmatprep.subr.bf16.mxu1 %v3342_v50 }
 0x803   :  { %2926 = vmatpush1.bf16.msra.mxu0 %v3753_v32 }
 0x804   :  { %2952 = vmatprep.subr.bf16.mxu0 %v3705_v44 }
 0x8b9   :  { %v1355_v3 = vpop.f32.mrb[8].mxu0 }
 0x8ba   :  { %v3071_v7 = vadd.f32 %v1355_v3, %v3597_v2  ;;  %v1357_v19 = vpop.f32.mrb[9].mxu0 }
 0x8bb   :  { %v3072_v43 = vadd.f32 %v1357_v19, %v3621_v25 }
 0x8bc   :  { %v2157_v27 = vmul.f32 -1.442695, %v3071_v7 }
 0x8bd   :  { %v2158_v48 = vmul.f32 -1.442695, %v3072_v43 }
 0x8be   :  { %3150 = vpow2.f32 %v2157_v27 }
 0x8c8   :  { %v3151_v35 = vpop.eup %3150 }
 0x8c9   :  { %v1364_v52 = vadd.f32 1.0, %v3151_v35 }
 0x8cb   :  { %3152 = vrcp.f32 %v1364_v52 }
 0x8cc   :  { %3154 = vpow2.f32 %v2158_v48 }
 0x8d5   :  { %v3153_v33 = vpop.eup %3152 }
 0x8d6   :  { %v1374_v34 = vmul.f32 %v3153_v33, %v3761_v58  ;;  %v3155_v51 = vpop.eup %3154 }
 0x8d7   :  { %v1371_v4 = vadd.f32 1.0, %v3155_v51 }
 0x8d8   :  { %2500 = vmatmul.mubr.f32.vlgmr.msra.gmra.mrb[16].mxu1 %v1374_v34 }
 0x8d9   :  { %2929 = vmatpush3.bf16.msra.mxu1 %v3782_v60  ;;  %2534 = vmatprep.mubr.msk.f32.mxu1 %vm3343_vm1, %v3341_v0 }
 0x8da   :  { %2930 = vmatprep.subr.bf16.mxu1 %v3342_v50 }
 0x8dd   :  { %2932 = vmatpush3.bf16.msra.mxu1 %v3786_v12 }
 0x8de   :  { %2933 = vmatprep.subr.bf16.mxu1 %v3342_v50 }
 0x8e1   :  { %2935 = vmatpush3.bf16.msra.mxu1 %v3790_v11 }
 0x8e2   :  { %2936 = vmatprep.subr.bf16.mxu1 %v3342_v50 }
 0x8e5   :  { %2938 = vmatpush3.bf16.msra.mxu1 %v3794_v20 }
 0x8e6   :  { %2939 = vmatprep.subr.bf16.mxu1 %v3342_v50 }
 0x8e9   :  { %2941 = vmatpush3.bf16.msra.mxu1 %v3798_v15 }
 0x8ea   :  { %2942 = vmatprep.subr.bf16.mxu1 %v3342_v50 }
 0x8ed   :  { %2944 = vmatpush3.bf16.msra.mxu1 %v3802_v29 }
 0x8ee   :  { %2945 = vmatprep.subr.bf16.mxu1 %v3342_v50 }
 0x8f1   :  { %2947 = vmatpush3.bf16.msra.mxu1 %v3805_v46 }
 0x8f2   :  { %2948 = vmatprep.subr.bf16.mxu1 %v3342_v50 }
 0x8f5   :  { %2950 = vmatpush3.bf16.msra.mxu1 %v3809_v62 }
 0x8f6   :  { %2983 = vmatprep.subr.bf16.mxu1 %v3342_v50 }
 0x9ab   :  { %v1457_v53 = vpop.f32.mrb[16].mxu1 }
 0x9ac   :  { %v1461_v41 = vadd.f32 %v1457_v53, %v3593_v59  ;;  %v2501_v45 = vpop.f32.mrb[17].mxu1 }
 0x9ae   :  { %3156 = vtanh.f32 %v1461_v41 }
 0x9af   :  { %3158 = vrcp.f32 %v1371_v4 }
 0x9b8   :  { %v3157_v49 = vpop.eup %3156 }
 0x9b9   :  { %v1463_v24 = vsub.f32 %v3761_v58, %v3157_v49  ;;  %v3159_v1 = vpop.eup %3158 }
 0x9bb   :  { %v1464_v6 = vmul.f32 %v3159_v1, %v1463_v24 }
 0x9bd   :  { %v1465_v8 = vadd.f32 %v3157_v49, %v1464_v6 }
 0x9bf   :  { %1467 = vst [vmem:[#allocation13 + $0x20] sm:$0xff] %v1465_v8  ;;  %1569 = vmatmul.mubr.f32.vlgmr.msra.gmra.mrb[10].mxu0 %v1465_v8 }
 0x9c0   :  { %2954 = vmatpush1.bf16.msra.mxu0 %v3707_v36  ;;  %1783 = vmatprep.mubr.f32.mxu0 %v3341_v0 }
 0x9c1   :  { %2956 = vmatprep.subr.bf16.mxu0 %v3709_v39 }
 0x9c4   :  { %2958 = vmatpush1.bf16.msra.mxu0 %v3713_v57 }
 0x9c5   :  { %2960 = vmatprep.subr.bf16.mxu0 %v3716_v37 }
 0x9c8   :  { %2962 = vmatpush1.bf16.msra.mxu0 %v3719_v42 }
 0x9c9   :  { %2964 = vmatprep.subr.bf16.mxu0 %v3727_v17 }
 0x9cc   :  { %2966 = vmatpush1.bf16.msra.mxu0 %v3729_v21 }
 0x9cd   :  { %2968 = vmatprep.subr.bf16.mxu0 %v3733_v31 }
 0x9d0   :  { %2970 = vmatpush1.bf16.msra.mxu0 %v3735_v22 }
 0x9d1   :  { %2972 = vmatprep.subr.bf16.mxu0 %v3738_v38 }
 0x9d4   :  { %2974 = vmatpush1.bf16.msra.mxu0 %v3741_v54 }
 0x9d5   :  { %2976 = vmatprep.subr.bf16.mxu0 %v3744_v55 }
 0x9d8   :  { %2978 = vmatpush1.bf16.msra.mxu0 %v3747_v10 }
 0x9d9   :  { %2980 = vmatprep.subr.bf16.mxu0 %v3750_v14 }
 0x9dc   :  { %2982 = vmatpush1.bf16.msra.mxu0 %v3753_v32 }
 0x9dd   :  { %3008 = vmatprep.subr.bf16.mxu0 %v3705_v44 }
 0xa92   :  { %v1570_v59 = vpop.f32.mrb[10].mxu0 }
 0xa93   :  { %v3073_v58 = vadd.f32 %v1570_v59, %v3597_v2  ;;  %v1572_v9 = vpop.f32.mrb[11].mxu0 }
 0xa94   :  { %v3074_v44 = vadd.f32 %v1572_v9, %v3621_v25 }
 0xa95   :  { %v2159_v13 = vmul.f32 -1.442695, %v3073_v58 }
 0xa96   :  { %v2160_v23 = vmul.f32 -1.442695, %v3074_v44 }
 0xa97   :  { %3160 = vpow2.f32 %v2159_v13 }
 0xaa1   :  { %v3161_v18 = vpop.eup %3160 }
 0xaa2   :  { %v1579_v26 = vadd.f32 1.0, %v3161_v18 }
 0xaa4   :  { %3162 = vrcp.f32 %v1579_v26 }
 0xaa5   :  { %3164 = vpow2.f32 %v2160_v23 }
 0xaae   :  { %v3163_v28 = vpop.eup %3162 }
 0xaaf   :  { %v1589_v16 = vmul.f32 %v3163_v28, %v1465_v8  ;;  %v3165_v30 = vpop.eup %3164 }
 0xab0   :  { %v1586_v47 = vadd.f32 1.0, %v3165_v30 }
 0xab1   :  { %2535 = vmatmul.mubr.f32.vlgmr.msra.gmra.mrb[18].mxu1 %v1589_v16 }
 0xab2   :  { %2985 = vmatpush3.bf16.msra.mxu1 %v3782_v60  ;;  %2569 = vmatprep.mubr.msk.f32.mxu1 %vm3343_vm1, %v3341_v0 }
 0xab3   :  { %2986 = vmatprep.subr.bf16.mxu1 %v3342_v50 }
 0xab6   :  { %2988 = vmatpush3.bf16.msra.mxu1 %v3786_v12 }
 0xab7   :  { %2989 = vmatprep.subr.bf16.mxu1 %v3342_v50 }
 0xaba   :  { %2991 = vmatpush3.bf16.msra.mxu1 %v3790_v11 }
 0xabb   :  { %2992 = vmatprep.subr.bf16.mxu1 %v3342_v50 }
 0xabe   :  { %2994 = vmatpush3.bf16.msra.mxu1 %v3794_v20 }
 0xabf   :  { %2995 = vmatprep.subr.bf16.mxu1 %v3342_v50 }
 0xac2   :  { %2997 = vmatpush3.bf16.msra.mxu1 %v3798_v15 }
 0xac3   :  { %2998 = vmatprep.subr.bf16.mxu1 %v3342_v50 }
 0xac6   :  { %3000 = vmatpush3.bf16.msra.mxu1 %v3802_v29 }
 0xac7   :  { %3001 = vmatprep.subr.bf16.mxu1 %v3342_v50 }
 0xaca   :  { %3003 = vmatpush3.bf16.msra.mxu1 %v3805_v46 }
 0xacb   :  { %3004 = vmatprep.subr.bf16.mxu1 %v3342_v50 }
 0xace   :  { %3006 = vmatpush3.bf16.msra.mxu1 %v3809_v62 }
 0xacf   :  { %3039 = vmatprep.subr.bf16.mxu1 %v3342_v50 }
 0xb84   :  { %v1672_v40 = vpop.f32.mrb[18].mxu1 }
 0xb85   :  { %v1676_v61 = vadd.f32 %v1672_v40, %v3591_v56  ;;  %v2536_v3 = vpop.f32.mrb[19].mxu1 }
 0xb87   :  { %3166 = vtanh.f32 %v1676_v61 }
 0xb88   :  { %3168 = vrcp.f32 %v1586_v47 }
 0xb91   :  { %v3167_v7 = vpop.eup %3166 }
 0xb92   :  { %v1678_v19 = vsub.f32 %v1465_v8, %v3167_v7  ;;  %v3169_v27 = vpop.eup %3168 }
 0xb94   :  { %v1679_v35 = vmul.f32 %v3169_v27, %v1678_v19 }
 0xb96   :  { %v1680_v52 = vadd.f32 %v3167_v7, %v1679_v35 }
 0xb98   :  { %1682 = vst [vmem:[#allocation13 + $0x28] sm:$0xff] %v1680_v52  ;;  %1784 = vmatmul.mubr.f32.vlgmr.msra.gmra.mrb[12].mxu0 %v1680_v52 }
 0xb99   :  { %3010 = vmatpush1.bf16.msra.mxu0 %v3707_v36  ;;  %1998 = vmatprep.mubr.f32.mxu0 %v3341_v0 }
 0xb9a   :  { %3012 = vmatprep.subr.bf16.mxu0 %v3709_v39 }
 0xb9d   :  { %3014 = vmatpush1.bf16.msra.mxu0 %v3713_v57 }
 0xb9e   :  { %3016 = vmatprep.subr.bf16.mxu0 %v3716_v37 }
 0xba1   :  { %3018 = vmatpush1.bf16.msra.mxu0 %v3719_v42 }
 0xba2   :  { %3020 = vmatprep.subr.bf16.mxu0 %v3727_v17 }
 0xba5   :  { %3022 = vmatpush1.bf16.msra.mxu0 %v3729_v21 }
 0xba6   :  { %3024 = vmatprep.subr.bf16.mxu0 %v3733_v31 }
 0xba9   :  { %3026 = vmatpush1.bf16.msra.mxu0 %v3735_v22 }
 0xbaa   :  { %3028 = vmatprep.subr.bf16.mxu0 %v3738_v38 }
 0xbad   :  { %3030 = vmatpush1.bf16.msra.mxu0 %v3741_v54 }
 0xbae   :  { %3032 = vmatprep.subr.bf16.mxu0 %v3744_v55 }
 0xbb1   :  { %3034 = vmatpush1.bf16.msra.mxu0 %v3747_v10 }
 0xbb2   :  { %3036 = vmatprep.subr.bf16.mxu0 %v3750_v14 }
 0xbb5   :  { %3038 = vmatpush1.bf16.msra.mxu0 %v3753_v32 }
 0xc6b   :  { %v1785_v56 = vpop.f32.mrb[12].mxu0 }
 0xc6c   :  { %v3075_v36 = vadd.f32 %v1785_v56, %v3597_v2  ;;  %v1787_v39 = vpop.f32.mrb[13].mxu0 }
 0xc6e   :  { %v2161_v57 = vmul.f32 -1.442695, %v3075_v36 }
 0xc70   :  { %3170 = vpow2.f32 %v2161_v57 }
 0xc7a   :  { %v3171_v37 = vpop.eup %3170 }
 0xc7b   :  { %v1794_v42 = vadd.f32 1.0, %v3171_v37 }
 0xc7d   :  { %3172 = vrcp.f32 %v1794_v42 }
 0xc87   :  { %v3173_v17 = vpop.eup %3172 }
 0xc88   :  { %v1804_v21 = vmul.f32 %v3173_v17, %v1680_v52 }
 0xc8a   :  { %2570 = vmatmul.mubr.f32.vlgmr.msra.gmra.mrb[20].mxu1 %v1804_v21 }
 0xc8b   :  { %3041 = vmatpush3.bf16.msra.mxu1 %v3782_v60  ;;  %2604 = vmatprep.mubr.msk.f32.mxu1 %vm3343_vm1, %v3341_v0  ;;  %v3076_v0 = vadd.f32 %v1787_v39, %v3621_v25 }
 0xc8c   :  { %3042 = vmatprep.subr.bf16.mxu1 %v3342_v50 }
 0xc8d   :  { %v2162_v31 = vmul.f32 -1.442695, %v3076_v0 }
 0xc8f   :  { %3044 = vmatpush3.bf16.msra.mxu1 %v3786_v12  ;;  %3174 = vpow2.f32 %v2162_v31 }
 0xc90   :  { %3045 = vmatprep.subr.bf16.mxu1 %v3342_v50 }
 0xc93   :  { %3047 = vmatpush3.bf16.msra.mxu1 %v3790_v11 }
 0xc94   :  { %3048 = vmatprep.subr.bf16.mxu1 %v3342_v50 }
 0xc97   :  { %3050 = vmatpush3.bf16.msra.mxu1 %v3794_v20 }
 0xc98   :  { %3051 = vmatprep.subr.bf16.mxu1 %v3342_v50 }
 0xc99   :  { %v3175_v22 = vpop.eup %3174 }
 0xc9a   :  { %v1801_v54 = vadd.f32 1.0, %v3175_v22 }
 0xc9b   :  { %3053 = vmatpush3.bf16.msra.mxu1 %v3798_v15 }
 0xc9c   :  { %3054 = vmatprep.subr.bf16.mxu1 %v3342_v50 }
 0xc9f   :  { %3056 = vmatpush3.bf16.msra.mxu1 %v3802_v29 }
 0xca0   :  { %3057 = vmatprep.subr.bf16.mxu1 %v3342_v50 }
 0xca3   :  { %3059 = vmatpush3.bf16.msra.mxu1 %v3805_v46 }
 0xca4   :  { %3060 = vmatprep.subr.bf16.mxu1 %v3342_v50 }
 0xca7   :  { %3062 = vmatpush3.bf16.msra.mxu1 %v3809_v62 }
 0xd5d   :  { %v1887_v38 = vpop.f32.mrb[20].mxu1 }
 0xd5e   :  { %v1891_v55 = vadd.f32 %v1887_v38, %v3599_v5  ;;  %v2571_v10 = vpop.f32.mrb[21].mxu1 }
 0xd60   :  { %3176 = vtanh.f32 %v1891_v55 }
 0xd61   :  { %3178 = vrcp.f32 %v1801_v54 }
 0xd6a   :  { %v3177_v14 = vpop.eup %3176 }
 0xd6b   :  { %v1893_v32 = vsub.f32 %v1680_v52, %v3177_v14  ;;  %v3179_v60 = vpop.eup %3178 }
 0xd6d   :  { %v1894_v12 = vmul.f32 %v3179_v60, %v1893_v32 }
 0xd6f   :  { %v1895_v11 = vadd.f32 %v3177_v14, %v1894_v12 }
 0xd71   :  { %1897 = vst [vmem:[#allocation13 + $0x30] sm:$0xff] %v1895_v11  ;;  %1999 = vmatmul.mubr.f32.vlgmr.msra.gmra.mrb[14].mxu0 %v1895_v11 }
 0xe44   :  { %v2000_v50 = vpop.f32.mrb[14].mxu0 }
 0xe45   :  { %v3077_v20 = vadd.f32 %v2000_v50, %v3597_v2  ;;  %v2002_v15 = vpop.f32.mrb[15].mxu0 }
 0xe46   :  { %v3078_v34 = vadd.f32 %v2002_v15, %v3621_v25 }
 0xe47   :  { %v2163_v29 = vmul.f32 -1.442695, %v3077_v20 }
 0xe48   :  { %v2164_v43 = vmul.f32 -1.442695, %v3078_v34 }
 0xe49   :  { %3180 = vpow2.f32 %v2163_v29 }
 0xe53   :  { %v3181_v46 = vpop.eup %3180 }
 0xe54   :  { %v2009_v62 = vadd.f32 1.0, %v3181_v46 }
 0xe56   :  { %3182 = vrcp.f32 %v2009_v62 }
 0xe57   :  { %3184 = vpow2.f32 %v2164_v43 }
 0xe60   :  { %v3183_v5 = vpop.eup %3182 }
 0xe61   :  { %v2019_v33 = vmul.f32 %v3183_v5, %v1895_v11  ;;  %v3185_v48 = vpop.eup %3184 }
 0xe62   :  { %v2016_v53 = vadd.f32 1.0, %v3185_v48 }
 0xe63   :  { %2605 = vmatmul.mubr.f32.vlgmr.msra.gmra.mrb[22].mxu1 %v2019_v33 }
 0xf36   :  { %v2102_v51 = vpop.f32.mrb[22].mxu1 }
 0xf37   :  { %v2106_v4 = vadd.f32 %v2102_v51, %v3595_v63  ;;  %v2606_v41 = vpop.f32.mrb[23].mxu1 }
 0xf39   :  { %3186 = vtanh.f32 %v2106_v4 }
 0xf3a   :  { %3188 = vrcp.f32 %v2016_v53 }
 0xf43   :  { %v3187_v2 = vpop.eup %3186 }
 0xf44   :  { %v2108_v45 = vsub.f32 %v1895_v11, %v3187_v2  ;;  %v3189_v49 = vpop.eup %3188 }
 0xf46   :  { %v2109_v24 = vmul.f32 %v3189_v49, %v2108_v45 }
 0xf48   :  { %v2110_v1 = vadd.f32 %v3187_v2, %v2109_v24 }
 0xf4a   :  { %2112 = vst [vmem:[#allocation13 + $0x38] sm:$0xff] %v2110_v1 }
 0xf4b   :  { %3311 = shalt.err (!%p3308_p2)
}
 0xf4c   :  { %s3312_s16 = scalar_lea.hbm %s3935_s6, 1024 }
 0xf4d   :  { %p3313_p3 = scmp.ne.s32.totalorder %s3935_s6, %s3312_s16  ;;  %p3316_p4 = scmp.lt.u32.totalorder %s3312_s16, %s3935_s6 }
 0xf4f   :  { %p3318_p5 = pnand %p3316_p4, %p3313_p3 }
 0xf51   :  { %3321 = shalt.err (!%p3318_p5)
}
 0xf52   :  { %2125 = dma.vmem_to_hbm [thread:$0]  %s2120_s12, 1024, %s3935_s6, [#allocation6], %s3335_s3, %s3335_s3, %s3336_s24  }
 0xf53   :  { %3328 = dma.done.wait [#allocation6], 1024  }
 0xf54   :  { %3329 = vsyncadd [#allocation6], 4294966272 }
 0xf55   :  { %2129 = vsyncpa [#allocation5], 1 }
 0xf56   :  { %2130 = vsyncpa [#allocation8], 1 }
 0xf57   :  { %2131 = vsyncpa [#allocation11], 1 }
 0xf58   :  { %2132 = vsyncpa [#allocation6], 1 }

</bundles_post_ra>
